<compile_context>
chip_gen: v5e
topology: v5e:2x2
jax: 0.10.0
libtpu: 0.0.40
codegen_flags: <defaults>
</compile_context>

<pallas_src>
import functools

import jax
import jax.numpy as jnp
from jax.experimental import pallas as pl
from jax.experimental.pallas import tpu as pltpu  # noqa: F401  (TPU backend)

# ----------------------------- configuration --------------------------------
B = 2              # batch size
IMG_HW = 16        # input image spatial size
C_IN = 3           # input image channels (RGB)
C_BACKBONE = 8     # backbone.num_channels (stand-in)
FEAT_HW = 8        # backbone output spatial size
HIDDEN = 32        # transformer.d_model
NUM_QUERIES = 8
NUM_CLASSES = 4    # class_embed outputs NUM_CLASSES + 1 logits
NUM_DEC_LAYERS = 3
HEAD_PAD = 128     # lane-dense padded output width for the prediction heads


# ----------------------------- Pallas kernel ---------------------------------
def _detr_fused_kernel(x_ref, mem_bias_ref, tgt0_ref, mask_ref,
                       w_ref, b_ref, out_w_ref, out_b_ref,
                       cls_out_ref, box_out_ref,
                       *, num_layers, hidden):
    """Whole DETR forward (post avg-pool) in one kernel invocation.

    x:(B*S, D) bf16 (channels zero-padded)   mem_bias:(B*S, D) = tiled pos + stem bias
    tgt0:(B*Q, D)   mask:(B*Q, B*S) block-diagonal additive mask
    w:(1+4L+2, D, D) bf16 = [stem, (Wq,Wk,Wv,Wo)xL, bbox_w0, bbox_w1]
    b:(1+4L+2, 1, D) f32   out_w:(2, D, 128) bf16 = [cls_pad, bbox_w2_pad]
    outputs: cls:(B*Q, 128) box:(B*Q, 128)  (last decoder layer only)
    """
    f32 = jnp.float32
    bf16 = jnp.bfloat16

    # ---- stem: folded (backbone channel proj . input_proj) + pos + bias ----
    mem = (jnp.dot(x_ref[...], w_ref[0], preferred_element_type=f32)
           + mem_bias_ref[...])                                   # (B*S, D) f32

    tgt = tgt0_ref[...]                                           # (B*Q, D) f32
    mask = mask_ref[...]                                          # (B*Q, B*S)
    scale = 1.0 / float(hidden) ** 0.5

    # ---- decoder stack: unrolled, single batched masked attention per layer
    for layer in range(num_layers):
        base = 1 + 4 * layer
        tgt_b = tgt.astype(bf16)
        mem_b = mem.astype(bf16)
        q = (jnp.dot(tgt_b, w_ref[base + 0], preferred_element_type=f32)
             + b_ref[base + 0])
        k = (jnp.dot(mem_b, w_ref[base + 1], preferred_element_type=f32)
             + b_ref[base + 1])
        v = (jnp.dot(mem_b, w_ref[base + 2], preferred_element_type=f32)
             + b_ref[base + 2])
        # scores: contract last dims of q and k (no explicit k.T transpose)
        s = jax.lax.dot_general(q.astype(bf16), k.astype(bf16),
                                (((1,), (1,)), ((), ())),
                                preferred_element_type=f32) * scale
        s = s + mask                                              # block-diag
        s = s - jnp.max(s, axis=-1, keepdims=True)
        p = jnp.exp(s)
        p = p * pl.reciprocal(jnp.sum(p, axis=-1, keepdims=True), approx=True)
        attn = jnp.dot(p.astype(bf16), v.astype(bf16),
                       preferred_element_type=f32)                # (B*Q, D)
        upd = (jnp.dot(attn.astype(bf16), w_ref[base + 3],
                       preferred_element_type=f32) + b_ref[base + 3])
        tgt = tgt + upd                                           # residual

    # ---- heads on the LAST decoder layer only (aux_loss=False) ----
    hs = tgt.astype(bf16)                                         # (B*Q, D)
    mi = 1 + 4 * num_layers                                       # bbox MLP idx
    cls_out_ref[...] = (jnp.dot(hs, out_w_ref[0], preferred_element_type=f32)
                        + out_b_ref[0])
    h = jnp.maximum(jnp.dot(hs, w_ref[mi], preferred_element_type=f32)
                    + b_ref[mi], 0.0)
    h = jnp.maximum(jnp.dot(h.astype(bf16), w_ref[mi + 1],
                            preferred_element_type=f32) + b_ref[mi + 1], 0.0)
    box_out_ref[...] = jax.nn.sigmoid(
        jnp.dot(h.astype(bf16), out_w_ref[1], preferred_element_type=f32)
        + out_b_ref[1])


# ----------------------------- parameter init --------------------------------
def sine_pos_embed(h, w, d):
    """Deterministic sinusoidal positional encoding, shape (h*w, d)."""
    pos = jnp.arange(h * w, dtype=jnp.float32)[:, None]
    dim = jnp.arange(d // 2, dtype=jnp.float32)[None, :]
    freq = jnp.exp(-jnp.log(10000.0) * (2.0 * dim / d))
    ang = pos * freq
    return jnp.concatenate([jnp.sin(ang), jnp.cos(ang)], axis=-1)


def init_params(key):
    ks = list(jax.random.split(key, 20))
    kit = iter(ks)

    def dense(fan_in, fan_out):
        return (jax.random.normal(next(kit), (fan_in, fan_out), jnp.float32)
                / jnp.sqrt(jnp.float32(fan_in)))

    # backbone stand-in (C_IN -> C_BACKBONE) and input_proj 1x1 conv
    # (C_BACKBONE -> HIDDEN), folded into one precomposed channel matmul.
    bb_w = dense(C_IN, C_BACKBONE)
    bb_b = jnp.zeros((1, C_BACKBONE), jnp.float32)
    pj_w = dense(C_BACKBONE, HIDDEN)
    pj_b = jnp.zeros((1, HIDDEN), jnp.float32)
    stem_w = bb_w @ pj_w                                           # (C_IN, D)
    stem_b = bb_b @ pj_w + pj_b                                    # (1, D)
    stem_w_pad = jnp.zeros((HIDDEN, HIDDEN),
                           jnp.float32).at[:C_IN, :].set(stem_w)

    # query_embed: nn.Embedding(NUM_QUERIES, HIDDEN)
    query_embed = jax.random.normal(next(kit), (NUM_QUERIES, HIDDEN),
                                    jnp.float32) * 0.1

    # decoder stand-in (Wq, Wk, Wv, Wo per layer) + bbox-MLP hidden layers,
    # stacked into one (1 + 4*L + 2, D, D) slab.  Slot 0 = folded stem weight.
    w_list = [stem_w_pad]
    b_list = [jnp.zeros((HIDDEN,), jnp.float32)]   # unused: stem bias folded
    for _ in range(NUM_DEC_LAYERS):
        for _ in range(4):
            w_list.append(dense(HIDDEN, HIDDEN))
            b_list.append(jnp.zeros((HIDDEN,), jnp.float32))
    for _ in range(2):                             # bbox MLP hidden layers
        w_list.append(dense(HIDDEN, HIDDEN))
        b_list.append(jnp.zeros((HIDDEN,), jnp.float32))
    w_stack = jnp.stack(w_list, axis=0).astype(jnp.bfloat16)       # (15, D, D)
    b_stack = jnp.stack(b_list, axis=0)[:, None, :]                # (15, 1, D)

    # output heads, zero-padded to HEAD_PAD lanes (unmasked lane-dense stores)
    nc1 = NUM_CLASSES + 1
    cls_w = dense(HIDDEN, nc1)
    box_w = dense(HIDDEN, 4)
    out_w = jnp.zeros((2, HIDDEN, HEAD_PAD), jnp.float32)
    out_w = out_w.at[0, :, :nc1].set(cls_w).at[1, :, :4].set(box_w)
    out_w = out_w.astype(jnp.bfloat16)
    out_b = jnp.zeros((2, 1, HEAD_PAD), jnp.float32)

    # precomputed batch-tiled constants (no in-kernel concatenates)
    seq = FEAT_HW * FEAT_HW
    pos = sine_pos_embed(FEAT_HW, FEAT_HW, HIDDEN)                 # (S, D)
    mem_bias = jnp.tile(pos, (B, 1)) + stem_b                      # (B*S, D)
    tgt0 = jnp.tile(query_embed, (B, 1))                           # (B*Q, D)
    qb = jnp.arange(B * NUM_QUERIES) // NUM_QUERIES
    kb = jnp.arange(B * seq) // seq
    attn_mask = jnp.where(qb[:, None] == kb[None, :], 0.0,
                          -1e30).astype(jnp.float32)               # (B*Q, B*S)

    return {
        "w_stack": w_stack, "b_stack": b_stack,
        "out_w": out_w, "out_b": out_b,
        "mem_bias": mem_bias, "tgt0": tgt0, "attn_mask": attn_mask,
    }


# ----------------------------- DETR forward ----------------------------------
def detr_forward(params, samples_tensor, samples_mask):
    """samples_tensor: (B, 3, H, W) NCHW ; samples_mask: (B, H, W) bool."""
    # TODO(synk): backbone.py / transformer.py were not provided; a minimal
    # deterministic stand-in (2x2 avg-pool backbone folded with input_proj and
    # a single-head cross-attention decoder stack) is used in their place.
    # TODO(synk): samples_mask (padding mask) is ignored by the stand-in.
    del samples_mask

    b, c_in, img_h, img_w = samples_tensor.shape
    hidden = params["w_stack"].shape[-1]
    num_layers = (params["w_stack"].shape[0] - 3) // 4
    num_queries = params["tgt0"].shape[0] // b
    seq = params["mem_bias"].shape[0] // b
    feat_h = feat_w = FEAT_HW
    stride = img_h // feat_h

    # backbone stand-in pooling + channel zero-pad to D + bf16 cast: one small
    # XLA fusion feeding the kernel a lane-aligned bf16 activation tile.
    x = jnp.transpose(samples_tensor, (0, 2, 3, 1))                # NCHW->NHWC
    x = x.reshape(b, feat_h, stride, feat_w, stride, c_in).mean(axis=(2, 4))
    x_flat = x.reshape(b * seq, c_in)
    x_pad = jnp.pad(x_flat, ((0, 0), (0, hidden - c_in))).astype(jnp.bfloat16)

    kernel = functools.partial(_detr_fused_kernel,
                               num_layers=num_layers, hidden=hidden)
    rows = b * num_queries

    # Single fused, gridless pallas_call: full arrays resident in VMEM.
    cls_pad, box_pad = pl.pallas_call(
        kernel,
        out_shape=(jax.ShapeDtypeStruct((rows, HEAD_PAD), jnp.float32),
                   jax.ShapeDtypeStruct((rows, HEAD_PAD), jnp.float32)),
        cost_estimate=pl.CostEstimate(flops=3_400_000,
                                      transcendentals=9_000,
                                      bytes_accessed=120_000),
    )(x_pad, params["mem_bias"], params["tgt0"], params["attn_mask"],
      params["w_stack"], params["b_stack"], params["out_w"], params["out_b"])

    nc1 = NUM_CLASSES + 1
    outputs_class = cls_pad[:, :nc1].reshape(b, num_queries, nc1)
    outputs_coord = box_pad[:, :4].reshape(b, num_queries, 4)

    # TODO(synk): aux_loss=False path only; per-layer aux outputs would need
    # the heads applied to every decoder layer (the earlier 3x-rows variant).
    return {
        "pred_logits": outputs_class,   # (B, Q, NUM_CLASSES + 1)
        "pred_boxes": outputs_coord,    # (B, Q, 4)
    }


# ----------------------------------- main ------------------------------------
if __name__ == "__main__":
    key = jax.random.PRNGKey(0)
    pkey, xkey = jax.random.split(key)
    params = init_params(pkey)

    samples_tensor = jax.random.normal(xkey, (B, C_IN, IMG_HW, IMG_HW),
                                       jnp.float32)
    samples_mask = jnp.zeros((B, IMG_HW, IMG_HW), dtype=jnp.bool_)

    detr_fn = jax.jit(detr_forward)
    out = detr_fn(params, samples_tensor, samples_mask)
    jax.block_until_ready(out)

    assert out["pred_logits"].shape == (B, NUM_QUERIES, NUM_CLASSES + 1)
    assert out["pred_boxes"].shape == (B, NUM_QUERIES, 4)
    assert bool(jnp.all((out["pred_boxes"] >= 0) & (out["pred_boxes"] <= 1)))
    print("KERNEL_OK")
</pallas_src>

<mosaic_0001>
module attributes {stable_mosaic.version = 11 : i64} {
  func.func @_detr_fused_kernel(%arg0: memref<128x32xbf16, #tpu.memory_space<vmem>>, %arg1: memref<128x32xf32, #tpu.memory_space<vmem>>, %arg2: memref<16x32xf32, #tpu.memory_space<vmem>>, %arg3: memref<16x128xf32, #tpu.memory_space<vmem>>, %arg4: memref<15x32x32xbf16, #tpu.memory_space<vmem>>, %arg5: memref<15x1x32xf32, #tpu.memory_space<vmem>>, %arg6: memref<2x32x128xbf16, #tpu.memory_space<vmem>>, %arg7: memref<2x1x128xf32, #tpu.memory_space<vmem>>, %arg8: memref<16x128xf32, #tpu.memory_space<vmem>>, %arg9: memref<16x128xf32, #tpu.memory_space<vmem>>) attributes {dimension_semantics = [], scalar_prefetch = 0 : i64, scratch_operands = 0 : i64, tpu.core_type = #tpu.core_type<tc>} {
    %c0 = arith.constant 0 : index
    %c0_0 = arith.constant 0 : index
    %0 = vector.load %arg0[%c0, %c0_0] : memref<128x32xbf16, #tpu.memory_space<vmem>>, vector<128x32xbf16>
    %c0_1 = arith.constant 0 : index
    %c0_2 = arith.constant 0 : index
    %c0_3 = arith.constant 0 : index
    %1 = vector.load %arg4[%c0_1, %c0_2, %c0_3] : memref<15x32x32xbf16, #tpu.memory_space<vmem>>, vector<1x32x32xbf16>
    %2 = vector.shape_cast %1 : vector<1x32x32xbf16> to vector<32x32xbf16>
    %cst = arith.constant dense<0.000000e+00> : vector<128x32xf32>
    %3 = tpu.matmul %0, %2, %cst {dimension_numbers = #tpu.dot_dimension_numbers<[1], [0], [0], [1], [0, 0, 1, 1], [], []>} : vector<128x32xbf16>, vector<32x32xbf16>, vector<128x32xf32> -> vector<128x32xf32>
    %c0_4 = arith.constant 0 : index
    %c0_5 = arith.constant 0 : index
    %4 = vector.load %arg1[%c0_4, %c0_5] : memref<128x32xf32, #tpu.memory_space<vmem>>, vector<128x32xf32>
    %5 = arith.addf %3, %4 : vector<128x32xf32>
    %c0_6 = arith.constant 0 : index
    %c0_7 = arith.constant 0 : index
    %6 = vector.load %arg2[%c0_6, %c0_7] : memref<16x32xf32, #tpu.memory_space<vmem>>, vector<16x32xf32>
    %c0_8 = arith.constant 0 : index
    %c0_9 = arith.constant 0 : index
    %7 = vector.load %arg3[%c0_8, %c0_9] : memref<16x128xf32, #tpu.memory_space<vmem>>, vector<16x128xf32>
    %8 = arith.truncf %6 : vector<16x32xf32> to vector<16x32xbf16>
    %9 = arith.truncf %5 : vector<128x32xf32> to vector<128x32xbf16>
    %c1 = arith.constant 1 : index
    %c0_10 = arith.constant 0 : index
    %c0_11 = arith.constant 0 : index
    %10 = vector.load %arg4[%c1, %c0_10, %c0_11] : memref<15x32x32xbf16, #tpu.memory_space<vmem>>, vector<1x32x32xbf16>
    %11 = vector.shape_cast %10 : vector<1x32x32xbf16> to vector<32x32xbf16>
    %cst_12 = arith.constant dense<0.000000e+00> : vector<16x32xf32>
    %12 = tpu.matmul %8, %11, %cst_12 {dimension_numbers = #tpu.dot_dimension_numbers<[1], [0], [0], [1], [0, 0, 1, 1], [], []>} : vector<16x32xbf16>, vector<32x32xbf16>, vector<16x32xf32> -> vector<16x32xf32>
    %c1_13 = arith.constant 1 : index
    %c0_14 = arith.constant 0 : index
    %c0_15 = arith.constant 0 : index
    %13 = vector.load %arg5[%c1_13, %c0_14, %c0_15] : memref<15x1x32xf32, #tpu.memory_space<vmem>>, vector<1x1x32xf32>
    %14 = vector.shape_cast %13 : vector<1x1x32xf32> to vector<1x32xf32>
    %15 = vector.broadcast %14 : vector<1x32xf32> to vector<16x32xf32>
    %16 = arith.addf %12, %15 : vector<16x32xf32>
    %c2 = arith.constant 2 : index
    %c0_16 = arith.constant 0 : index
    %c0_17 = arith.constant 0 : index
    %17 = vector.load %arg4[%c2, %c0_16, %c0_17] : memref<15x32x32xbf16, #tpu.memory_space<vmem>>, vector<1x32x32xbf16>
    %18 = vector.shape_cast %17 : vector<1x32x32xbf16> to vector<32x32xbf16>
    %cst_18 = arith.constant dense<0.000000e+00> : vector<128x32xf32>
    %19 = tpu.matmul %9, %18, %cst_18 {dimension_numbers = #tpu.dot_dimension_numbers<[1], [0], [0], [1], [0, 0, 1, 1], [], []>} : vector<128x32xbf16>, vector<32x32xbf16>, vector<128x32xf32> -> vector<128x32xf32>
    %c2_19 = arith.constant 2 : index
    %c0_20 = arith.constant 0 : index
    %c0_21 = arith.constant 0 : index
    %20 = vector.load %arg5[%c2_19, %c0_20, %c0_21] : memref<15x1x32xf32, #tpu.memory_space<vmem>>, vector<1x1x32xf32>
    %21 = vector.shape_cast %20 : vector<1x1x32xf32> to vector<1x32xf32>
    %22 = vector.broadcast %21 : vector<1x32xf32> to vector<128x32xf32>
    %23 = arith.addf %19, %22 : vector<128x32xf32>
    %c3 = arith.constant 3 : index
    %c0_22 = arith.constant 0 : index
    %c0_23 = arith.constant 0 : index
    %24 = vector.load %arg4[%c3, %c0_22, %c0_23] : memref<15x32x32xbf16, #tpu.memory_space<vmem>>, vector<1x32x32xbf16>
    %25 = vector.shape_cast %24 : vector<1x32x32xbf16> to vector<32x32xbf16>
    %cst_24 = arith.constant dense<0.000000e+00> : vector<128x32xf32>
    %26 = tpu.matmul %9, %25, %cst_24 {dimension_numbers = #tpu.dot_dimension_numbers<[1], [0], [0], [1], [0, 0, 1, 1], [], []>} : vector<128x32xbf16>, vector<32x32xbf16>, vector<128x32xf32> -> vector<128x32xf32>
    %c3_25 = arith.constant 3 : index
    %c0_26 = arith.constant 0 : index
    %c0_27 = arith.constant 0 : index
    %27 = vector.load %arg5[%c3_25, %c0_26, %c0_27] : memref<15x1x32xf32, #tpu.memory_space<vmem>>, vector<1x1x32xf32>
    %28 = vector.shape_cast %27 : vector<1x1x32xf32> to vector<1x32xf32>
    %29 = vector.broadcast %28 : vector<1x32xf32> to vector<128x32xf32>
    %30 = arith.addf %26, %29 : vector<128x32xf32>
    %31 = arith.truncf %16 : vector<16x32xf32> to vector<16x32xbf16>
    %32 = arith.truncf %23 : vector<128x32xf32> to vector<128x32xbf16>
    %cst_28 = arith.constant dense<0.000000e+00> : vector<16x128xf32>
    %33 = tpu.matmul %31, %32, %cst_28 {dimension_numbers = #tpu.dot_dimension_numbers<[1], [1], [0], [0], [0, 0, 1, 0], [], []>} : vector<16x32xbf16>, vector<128x32xbf16>, vector<16x128xf32> -> vector<16x128xf32>
    %cst_29 = arith.constant 0.176776692 : f32
    %34 = vector.broadcast %cst_29 : f32 to vector<16x128xf32>
    %35 = arith.mulf %33, %34 : vector<16x128xf32>
    %36 = arith.addf %35, %7 : vector<16x128xf32>
    %cst_30 = arith.constant dense<0xFF800000> : vector<16xf32>
    %37 = vector.multi_reduction <maximumf>, %36, %cst_30 [1] : vector<16x128xf32> to vector<16xf32>
    %38 = vector.shape_cast %37 : vector<16xf32> to vector<16x1xf32>
    %39 = vector.broadcast %38 : vector<16x1xf32> to vector<16x128xf32>
    %40 = arith.subf %36, %39 : vector<16x128xf32>
    %41 = math.exp %40 : vector<16x128xf32>
    %cst_31 = arith.constant dense<0.000000e+00> : vector<16xf32>
    %42 = vector.multi_reduction <add>, %41, %cst_31 [1] : vector<16x128xf32> to vector<16xf32>
    %43 = vector.shape_cast %42 : vector<16xf32> to vector<16x1xf32>
    %44 = tpu.reciprocal %43 {approx = true} : vector<16x1xf32> -> vector<16x1xf32>
    %45 = vector.broadcast %44 : vector<16x1xf32> to vector<16x128xf32>
    %46 = arith.mulf %41, %45 : vector<16x128xf32>
    %47 = arith.truncf %46 : vector<16x128xf32> to vector<16x128xbf16>
    %48 = arith.truncf %30 : vector<128x32xf32> to vector<128x32xbf16>
    %cst_32 = arith.constant dense<0.000000e+00> : vector<16x32xf32>
    %49 = tpu.matmul %47, %48, %cst_32 {dimension_numbers = #tpu.dot_dimension_numbers<[1], [0], [0], [1], [0, 0, 1, 1], [], []>} : vector<16x128xbf16>, vector<128x32xbf16>, vector<16x32xf32> -> vector<16x32xf32>
    %50 = arith.truncf %49 : vector<16x32xf32> to vector<16x32xbf16>
    %c4 = arith.constant 4 : index
    %c0_33 = arith.constant 0 : index
    %c0_34 = arith.constant 0 : index
    %51 = vector.load %arg4[%c4, %c0_33, %c0_34] : memref<15x32x32xbf16, #tpu.memory_space<vmem>>, vector<1x32x32xbf16>
    %52 = vector.shape_cast %51 : vector<1x32x32xbf16> to vector<32x32xbf16>
    %cst_35 = arith.constant dense<0.000000e+00> : vector<16x32xf32>
    %53 = tpu.matmul %50, %52, %cst_35 {dimension_numbers = #tpu.dot_dimension_numbers<[1], [0], [0], [1], [0, 0, 1, 1], [], []>} : vector<16x32xbf16>, vector<32x32xbf16>, vector<16x32xf32> -> vector<16x32xf32>
    %c4_36 = arith.constant 4 : index
    %c0_37 = arith.constant 0 : index
    %c0_38 = arith.constant 0 : index
    %54 = vector.load %arg5[%c4_36, %c0_37, %c0_38] : memref<15x1x32xf32, #tpu.memory_space<vmem>>, vector<1x1x32xf32>
    %55 = vector.shape_cast %54 : vector<1x1x32xf32> to vector<1x32xf32>
    %56 = vector.broadcast %55 : vector<1x32xf32> to vector<16x32xf32>
    %57 = arith.addf %53, %56 : vector<16x32xf32>
    %58 = arith.addf %6, %57 : vector<16x32xf32>
    %59 = arith.truncf %58 : vector<16x32xf32> to vector<16x32xbf16>
    %60 = arith.truncf %5 : vector<128x32xf32> to vector<128x32xbf16>
    %c5 = arith.constant 5 : index
    %c0_39 = arith.constant 0 : index
    %c0_40 = arith.constant 0 : index
    %61 = vector.load %arg4[%c5, %c0_39, %c0_40] : memref<15x32x32xbf16, #tpu.memory_space<vmem>>, vector<1x32x32xbf16>
    %62 = vector.shape_cast %61 : vector<1x32x32xbf16> to vector<32x32xbf16>
    %cst_41 = arith.constant dense<0.000000e+00> : vector<16x32xf32>
    %63 = tpu.matmul %59, %62, %cst_41 {dimension_numbers = #tpu.dot_dimension_numbers<[1], [0], [0], [1], [0, 0, 1, 1], [], []>} : vector<16x32xbf16>, vector<32x32xbf16>, vector<16x32xf32> -> vector<16x32xf32>
    %c5_42 = arith.constant 5 : index
    %c0_43 = arith.constant 0 : index
    %c0_44 = arith.constant 0 : index
    %64 = vector.load %arg5[%c5_42, %c0_43, %c0_44] : memref<15x1x32xf32, #tpu.memory_space<vmem>>, vector<1x1x32xf32>
    %65 = vector.shape_cast %64 : vector<1x1x32xf32> to vector<1x32xf32>
    %66 = vector.broadcast %65 : vector<1x32xf32> to vector<16x32xf32>
    %67 = arith.addf %63, %66 : vector<16x32xf32>
    %c6 = arith.constant 6 : index
    %c0_45 = arith.constant 0 : index
    %c0_46 = arith.constant 0 : index
    %68 = vector.load %arg4[%c6, %c0_45, %c0_46] : memref<15x32x32xbf16, #tpu.memory_space<vmem>>, vector<1x32x32xbf16>
    %69 = vector.shape_cast %68 : vector<1x32x32xbf16> to vector<32x32xbf16>
    %cst_47 = arith.constant dense<0.000000e+00> : vector<128x32xf32>
    %70 = tpu.matmul %60, %69, %cst_47 {dimension_numbers = #tpu.dot_dimension_numbers<[1], [0], [0], [1], [0, 0, 1, 1], [], []>} : vector<128x32xbf16>, vector<32x32xbf16>, vector<128x32xf32> -> vector<128x32xf32>
    %c6_48 = arith.constant 6 : index
    %c0_49 = arith.constant 0 : index
    %c0_50 = arith.constant 0 : index
    %71 = vector.load %arg5[%c6_48, %c0_49, %c0_50] : memref<15x1x32xf32, #tpu.memory_space<vmem>>, vector<1x1x32xf32>
    %72 = vector.shape_cast %71 : vector<1x1x32xf32> to vector<1x32xf32>
    %73 = vector.broadcast %72 : vector<1x32xf32> to vector<128x32xf32>
    %74 = arith.addf %70, %73 : vector<128x32xf32>
    %c7 = arith.constant 7 : index
    %c0_51 = arith.constant 0 : index
    %c0_52 = arith.constant 0 : index
    %75 = vector.load %arg4[%c7, %c0_51, %c0_52] : memref<15x32x32xbf16, #tpu.memory_space<vmem>>, vector<1x32x32xbf16>
    %76 = vector.shape_cast %75 : vector<1x32x32xbf16> to vector<32x32xbf16>
    %cst_53 = arith.constant dense<0.000000e+00> : vector<128x32xf32>
    %77 = tpu.matmul %60, %76, %cst_53 {dimension_numbers = #tpu.dot_dimension_numbers<[1], [0], [0], [1], [0, 0, 1, 1], [], []>} : vector<128x32xbf16>, vector<32x32xbf16>, vector<128x32xf32> -> vector<128x32xf32>
    %c7_54 = arith.constant 7 : index
    %c0_55 = arith.constant 0 : index
    %c0_56 = arith.constant 0 : index
    %78 = vector.load %arg5[%c7_54, %c0_55, %c0_56] : memref<15x1x32xf32, #tpu.memory_space<vmem>>, vector<1x1x32xf32>
    %79 = vector.shape_cast %78 : vector<1x1x32xf32> to vector<1x32xf32>
    %80 = vector.broadcast %79 : vector<1x32xf32> to vector<128x32xf32>
    %81 = arith.addf %77, %80 : vector<128x32xf32>
    %82 = arith.truncf %67 : vector<16x32xf32> to vector<16x32xbf16>
    %83 = arith.truncf %74 : vector<128x32xf32> to vector<128x32xbf16>
    %cst_57 = arith.constant dense<0.000000e+00> : vector<16x128xf32>
    %84 = tpu.matmul %82, %83, %cst_57 {dimension_numbers = #tpu.dot_dimension_numbers<[1], [1], [0], [0], [0, 0, 1, 0], [], []>} : vector<16x32xbf16>, vector<128x32xbf16>, vector<16x128xf32> -> vector<16x128xf32>
    %cst_58 = arith.constant 0.176776692 : f32
    %85 = vector.broadcast %cst_58 : f32 to vector<16x128xf32>
    %86 = arith.mulf %84, %85 : vector<16x128xf32>
    %87 = arith.addf %86, %7 : vector<16x128xf32>
    %cst_59 = arith.constant dense<0xFF800000> : vector<16xf32>
    %88 = vector.multi_reduction <maximumf>, %87, %cst_59 [1] : vector<16x128xf32> to vector<16xf32>
    %89 = vector.shape_cast %88 : vector<16xf32> to vector<16x1xf32>
    %90 = vector.broadcast %89 : vector<16x1xf32> to vector<16x128xf32>
    %91 = arith.subf %87, %90 : vector<16x128xf32>
    %92 = math.exp %91 : vector<16x128xf32>
    %cst_60 = arith.constant dense<0.000000e+00> : vector<16xf32>
    %93 = vector.multi_reduction <add>, %92, %cst_60 [1] : vector<16x128xf32> to vector<16xf32>
    %94 = vector.shape_cast %93 : vector<16xf32> to vector<16x1xf32>
    %95 = tpu.reciprocal %94 {approx = true} : vector<16x1xf32> -> vector<16x1xf32>
    %96 = vector.broadcast %95 : vector<16x1xf32> to vector<16x128xf32>
    %97 = arith.mulf %92, %96 : vector<16x128xf32>
    %98 = arith.truncf %97 : vector<16x128xf32> to vector<16x128xbf16>
    %99 = arith.truncf %81 : vector<128x32xf32> to vector<128x32xbf16>
    %cst_61 = arith.constant dense<0.000000e+00> : vector<16x32xf32>
    %100 = tpu.matmul %98, %99, %cst_61 {dimension_numbers = #tpu.dot_dimension_numbers<[1], [0], [0], [1], [0, 0, 1, 1], [], []>} : vector<16x128xbf16>, vector<128x32xbf16>, vector<16x32xf32> -> vector<16x32xf32>
    %101 = arith.truncf %100 : vector<16x32xf32> to vector<16x32xbf16>
    %c8 = arith.constant 8 : index
    %c0_62 = arith.constant 0 : index
    %c0_63 = arith.constant 0 : index
    %102 = vector.load %arg4[%c8, %c0_62, %c0_63] : memref<15x32x32xbf16, #tpu.memory_space<vmem>>, vector<1x32x32xbf16>
    %103 = vector.shape_cast %102 : vector<1x32x32xbf16> to vector<32x32xbf16>
    %cst_64 = arith.constant dense<0.000000e+00> : vector<16x32xf32>
    %104 = tpu.matmul %101, %103, %cst_64 {dimension_numbers = #tpu.dot_dimension_numbers<[1], [0], [0], [1], [0, 0, 1, 1], [], []>} : vector<16x32xbf16>, vector<32x32xbf16>, vector<16x32xf32> -> vector<16x32xf32>
    %c8_65 = arith.constant 8 : index
    %c0_66 = arith.constant 0 : index
    %c0_67 = arith.constant 0 : index
    %105 = vector.load %arg5[%c8_65, %c0_66, %c0_67] : memref<15x1x32xf32, #tpu.memory_space<vmem>>, vector<1x1x32xf32>
    %106 = vector.shape_cast %105 : vector<1x1x32xf32> to vector<1x32xf32>
    %107 = vector.broadcast %106 : vector<1x32xf32> to vector<16x32xf32>
    %108 = arith.addf %104, %107 : vector<16x32xf32>
    %109 = arith.addf %58, %108 : vector<16x32xf32>
    %110 = arith.truncf %109 : vector<16x32xf32> to vector<16x32xbf16>
    %111 = arith.truncf %5 : vector<128x32xf32> to vector<128x32xbf16>
    %c9 = arith.constant 9 : index
    %c0_68 = arith.constant 0 : index
    %c0_69 = arith.constant 0 : index
    %112 = vector.load %arg4[%c9, %c0_68, %c0_69] : memref<15x32x32xbf16, #tpu.memory_space<vmem>>, vector<1x32x32xbf16>
    %113 = vector.shape_cast %112 : vector<1x32x32xbf16> to vector<32x32xbf16>
    %cst_70 = arith.constant dense<0.000000e+00> : vector<16x32xf32>
    %114 = tpu.matmul %110, %113, %cst_70 {dimension_numbers = #tpu.dot_dimension_numbers<[1], [0], [0], [1], [0, 0, 1, 1], [], []>} : vector<16x32xbf16>, vector<32x32xbf16>, vector<16x32xf32> -> vector<16x32xf32>
    %c9_71 = arith.constant 9 : index
    %c0_72 = arith.constant 0 : index
    %c0_73 = arith.constant 0 : index
    %115 = vector.load %arg5[%c9_71, %c0_72, %c0_73] : memref<15x1x32xf32, #tpu.memory_space<vmem>>, vector<1x1x32xf32>
    %116 = vector.shape_cast %115 : vector<1x1x32xf32> to vector<1x32xf32>
    %117 = vector.broadcast %116 : vector<1x32xf32> to vector<16x32xf32>
    %118 = arith.addf %114, %117 : vector<16x32xf32>
    %c10 = arith.constant 10 : index
    %c0_74 = arith.constant 0 : index
    %c0_75 = arith.constant 0 : index
    %119 = vector.load %arg4[%c10, %c0_74, %c0_75] : memref<15x32x32xbf16, #tpu.memory_space<vmem>>, vector<1x32x32xbf16>
    %120 = vector.shape_cast %119 : vector<1x32x32xbf16> to vector<32x32xbf16>
    %cst_76 = arith.constant dense<0.000000e+00> : vector<128x32xf32>
    %121 = tpu.matmul %111, %120, %cst_76 {dimension_numbers = #tpu.dot_dimension_numbers<[1], [0], [0], [1], [0, 0, 1, 1], [], []>} : vector<128x32xbf16>, vector<32x32xbf16>, vector<128x32xf32> -> vector<128x32xf32>
    %c10_77 = arith.constant 10 : index
    %c0_78 = arith.constant 0 : index
    %c0_79 = arith.constant 0 : index
    %122 = vector.load %arg5[%c10_77, %c0_78, %c0_79] : memref<15x1x32xf32, #tpu.memory_space<vmem>>, vector<1x1x32xf32>
    %123 = vector.shape_cast %122 : vector<1x1x32xf32> to vector<1x32xf32>
    %124 = vector.broadcast %123 : vector<1x32xf32> to vector<128x32xf32>
    %125 = arith.addf %121, %124 : vector<128x32xf32>
    %c11 = arith.constant 11 : index
    %c0_80 = arith.constant 0 : index
    %c0_81 = arith.constant 0 : index
    %126 = vector.load %arg4[%c11, %c0_80, %c0_81] : memref<15x32x32xbf16, #tpu.memory_space<vmem>>, vector<1x32x32xbf16>
    %127 = vector.shape_cast %126 : vector<1x32x32xbf16> to vector<32x32xbf16>
    %cst_82 = arith.constant dense<0.000000e+00> : vector<128x32xf32>
    %128 = tpu.matmul %111, %127, %cst_82 {dimension_numbers = #tpu.dot_dimension_numbers<[1], [0], [0], [1], [0, 0, 1, 1], [], []>} : vector<128x32xbf16>, vector<32x32xbf16>, vector<128x32xf32> -> vector<128x32xf32>
    %c11_83 = arith.constant 11 : index
    %c0_84 = arith.constant 0 : index
    %c0_85 = arith.constant 0 : index
    %129 = vector.load %arg5[%c11_83, %c0_84, %c0_85] : memref<15x1x32xf32, #tpu.memory_space<vmem>>, vector<1x1x32xf32>
    %130 = vector.shape_cast %129 : vector<1x1x32xf32> to vector<1x32xf32>
    %131 = vector.broadcast %130 : vector<1x32xf32> to vector<128x32xf32>
    %132 = arith.addf %128, %131 : vector<128x32xf32>
    %133 = arith.truncf %118 : vector<16x32xf32> to vector<16x32xbf16>
    %134 = arith.truncf %125 : vector<128x32xf32> to vector<128x32xbf16>
    %cst_86 = arith.constant dense<0.000000e+00> : vector<16x128xf32>
    %135 = tpu.matmul %133, %134, %cst_86 {dimension_numbers = #tpu.dot_dimension_numbers<[1], [1], [0], [0], [0, 0, 1, 0], [], []>} : vector<16x32xbf16>, vector<128x32xbf16>, vector<16x128xf32> -> vector<16x128xf32>
    %cst_87 = arith.constant 0.176776692 : f32
    %136 = vector.broadcast %cst_87 : f32 to vector<16x128xf32>
    %137 = arith.mulf %135, %136 : vector<16x128xf32>
    %138 = arith.addf %137, %7 : vector<16x128xf32>
    %cst_88 = arith.constant dense<0xFF800000> : vector<16xf32>
    %139 = vector.multi_reduction <maximumf>, %138, %cst_88 [1] : vector<16x128xf32> to vector<16xf32>
    %140 = vector.shape_cast %139 : vector<16xf32> to vector<16x1xf32>
    %141 = vector.broadcast %140 : vector<16x1xf32> to vector<16x128xf32>
    %142 = arith.subf %138, %141 : vector<16x128xf32>
    %143 = math.exp %142 : vector<16x128xf32>
    %cst_89 = arith.constant dense<0.000000e+00> : vector<16xf32>
    %144 = vector.multi_reduction <add>, %143, %cst_89 [1] : vector<16x128xf32> to vector<16xf32>
    %145 = vector.shape_cast %144 : vector<16xf32> to vector<16x1xf32>
    %146 = tpu.reciprocal %145 {approx = true} : vector<16x1xf32> -> vector<16x1xf32>
    %147 = vector.broadcast %146 : vector<16x1xf32> to vector<16x128xf32>
    %148 = arith.mulf %143, %147 : vector<16x128xf32>
    %149 = arith.truncf %148 : vector<16x128xf32> to vector<16x128xbf16>
    %150 = arith.truncf %132 : vector<128x32xf32> to vector<128x32xbf16>
    %cst_90 = arith.constant dense<0.000000e+00> : vector<16x32xf32>
    %151 = tpu.matmul %149, %150, %cst_90 {dimension_numbers = #tpu.dot_dimension_numbers<[1], [0], [0], [1], [0, 0, 1, 1], [], []>} : vector<16x128xbf16>, vector<128x32xbf16>, vector<16x32xf32> -> vector<16x32xf32>
    %152 = arith.truncf %151 : vector<16x32xf32> to vector<16x32xbf16>
    %c12 = arith.constant 12 : index
    %c0_91 = arith.constant 0 : index
    %c0_92 = arith.constant 0 : index
    %153 = vector.load %arg4[%c12, %c0_91, %c0_92] : memref<15x32x32xbf16, #tpu.memory_space<vmem>>, vector<1x32x32xbf16>
    %154 = vector.shape_cast %153 : vector<1x32x32xbf16> to vector<32x32xbf16>
    %cst_93 = arith.constant dense<0.000000e+00> : vector<16x32xf32>
    %155 = tpu.matmul %152, %154, %cst_93 {dimension_numbers = #tpu.dot_dimension_numbers<[1], [0], [0], [1], [0, 0, 1, 1], [], []>} : vector<16x32xbf16>, vector<32x32xbf16>, vector<16x32xf32> -> vector<16x32xf32>
    %c12_94 = arith.constant 12 : index
    %c0_95 = arith.constant 0 : index
    %c0_96 = arith.constant 0 : index
    %156 = vector.load %arg5[%c12_94, %c0_95, %c0_96] : memref<15x1x32xf32, #tpu.memory_space<vmem>>, vector<1x1x32xf32>
    %157 = vector.shape_cast %156 : vector<1x1x32xf32> to vector<1x32xf32>
    %158 = vector.broadcast %157 : vector<1x32xf32> to vector<16x32xf32>
    %159 = arith.addf %155, %158 : vector<16x32xf32>
    %160 = arith.addf %109, %159 : vector<16x32xf32>
    %161 = arith.truncf %160 : vector<16x32xf32> to vector<16x32xbf16>
    %c0_97 = arith.constant 0 : index
    %c0_98 = arith.constant 0 : index
    %c0_99 = arith.constant 0 : index
    %162 = vector.load %arg6[%c0_97, %c0_98, %c0_99] : memref<2x32x128xbf16, #tpu.memory_space<vmem>>, vector<1x32x128xbf16>
    %163 = vector.shape_cast %162 : vector<1x32x128xbf16> to vector<32x128xbf16>
    %cst_100 = arith.constant dense<0.000000e+00> : vector<16x128xf32>
    %164 = tpu.matmul %161, %163, %cst_100 {dimension_numbers = #tpu.dot_dimension_numbers<[1], [0], [0], [1], [0, 0, 1, 1], [], []>} : vector<16x32xbf16>, vector<32x128xbf16>, vector<16x128xf32> -> vector<16x128xf32>
    %c0_101 = arith.constant 0 : index
    %c0_102 = arith.constant 0 : index
    %c0_103 = arith.constant 0 : index
    %165 = vector.load %arg7[%c0_101, %c0_102, %c0_103] : memref<2x1x128xf32, #tpu.memory_space<vmem>>, vector<1x1x128xf32>
    %166 = vector.shape_cast %165 : vector<1x1x128xf32> to vector<1x128xf32>
    %167 = vector.broadcast %166 : vector<1x128xf32> to vector<16x128xf32>
    %168 = arith.addf %164, %167 : vector<16x128xf32>
    %c0_104 = arith.constant 0 : index
    %c0_105 = arith.constant 0 : index
    %169 = vector.load %arg8[%c0_104, %c0_105] : memref<16x128xf32, #tpu.memory_space<vmem>>, vector<16x128xf32>
    tpu.vector_store %arg8[%c0_104, %c0_105], %168 {strides = array<i32>} : memref<16x128xf32, #tpu.memory_space<vmem>>, vector<16x128xf32>,
    %c13 = arith.constant 13 : index
    %c0_106 = arith.constant 0 : index
    %c0_107 = arith.constant 0 : index
    %170 = vector.load %arg4[%c13, %c0_106, %c0_107] : memref<15x32x32xbf16, #tpu.memory_space<vmem>>, vector<1x32x32xbf16>
    %171 = vector.shape_cast %170 : vector<1x32x32xbf16> to vector<32x32xbf16>
    %cst_108 = arith.constant dense<0.000000e+00> : vector<16x32xf32>
    %172 = tpu.matmul %161, %171, %cst_108 {dimension_numbers = #tpu.dot_dimension_numbers<[1], [0], [0], [1], [0, 0, 1, 1], [], []>} : vector<16x32xbf16>, vector<32x32xbf16>, vector<16x32xf32> -> vector<16x32xf32>
    %c13_109 = arith.constant 13 : index
    %c0_110 = arith.constant 0 : index
    %c0_111 = arith.constant 0 : index
    %173 = vector.load %arg5[%c13_109, %c0_110, %c0_111] : memref<15x1x32xf32, #tpu.memory_space<vmem>>, vector<1x1x32xf32>
    %174 = vector.shape_cast %173 : vector<1x1x32xf32> to vector<1x32xf32>
    %175 = vector.broadcast %174 : vector<1x32xf32> to vector<16x32xf32>
    %176 = arith.addf %172, %175 : vector<16x32xf32>
    %cst_112 = arith.constant 0.000000e+00 : f32
    %177 = vector.broadcast %cst_112 : f32 to vector<16x32xf32>
    %178 = arith.maximumf %176, %177 : vector<16x32xf32>
    %179 = arith.truncf %178 : vector<16x32xf32> to vector<16x32xbf16>
    %c14 = arith.constant 14 : index
    %c0_113 = arith.constant 0 : index
    %c0_114 = arith.constant 0 : index
    %180 = vector.load %arg4[%c14, %c0_113, %c0_114] : memref<15x32x32xbf16, #tpu.memory_space<vmem>>, vector<1x32x32xbf16>
    %181 = vector.shape_cast %180 : vector<1x32x32xbf16> to vector<32x32xbf16>
    %cst_115 = arith.constant dense<0.000000e+00> : vector<16x32xf32>
    %182 = tpu.matmul %179, %181, %cst_115 {dimension_numbers = #tpu.dot_dimension_numbers<[1], [0], [0], [1], [0, 0, 1, 1], [], []>} : vector<16x32xbf16>, vector<32x32xbf16>, vector<16x32xf32> -> vector<16x32xf32>
    %c14_116 = arith.constant 14 : index
    %c0_117 = arith.constant 0 : index
    %c0_118 = arith.constant 0 : index
    %183 = vector.load %arg5[%c14_116, %c0_117, %c0_118] : memref<15x1x32xf32, #tpu.memory_space<vmem>>, vector<1x1x32xf32>
    %184 = vector.shape_cast %183 : vector<1x1x32xf32> to vector<1x32xf32>
    %185 = vector.broadcast %184 : vector<1x32xf32> to vector<16x32xf32>
    %186 = arith.addf %182, %185 : vector<16x32xf32>
    %cst_119 = arith.constant 0.000000e+00 : f32
    %187 = vector.broadcast %cst_119 : f32 to vector<16x32xf32>
    %188 = arith.maximumf %186, %187 : vector<16x32xf32>
    %189 = arith.truncf %188 : vector<16x32xf32> to vector<16x32xbf16>
    %c1_120 = arith.constant 1 : index
    %c0_121 = arith.constant 0 : index
    %c0_122 = arith.constant 0 : index
    %190 = vector.load %arg6[%c1_120, %c0_121, %c0_122] : memref<2x32x128xbf16, #tpu.memory_space<vmem>>, vector<1x32x128xbf16>
    %191 = vector.shape_cast %190 : vector<1x32x128xbf16> to vector<32x128xbf16>
    %cst_123 = arith.constant dense<0.000000e+00> : vector<16x128xf32>
    %192 = tpu.matmul %189, %191, %cst_123 {dimension_numbers = #tpu.dot_dimension_numbers<[1], [0], [0], [1], [0, 0, 1, 1], [], []>} : vector<16x32xbf16>, vector<32x128xbf16>, vector<16x128xf32> -> vector<16x128xf32>
    %c1_124 = arith.constant 1 : index
    %c0_125 = arith.constant 0 : index
    %c0_126 = arith.constant 0 : index
    %193 = vector.load %arg7[%c1_124, %c0_125, %c0_126] : memref<2x1x128xf32, #tpu.memory_space<vmem>>, vector<1x1x128xf32>
    %194 = vector.shape_cast %193 : vector<1x1x128xf32> to vector<1x128xf32>
    %195 = vector.broadcast %194 : vector<1x128xf32> to vector<16x128xf32>
    %196 = arith.addf %192, %195 : vector<16x128xf32>
    %197 = arith.negf %196 : vector<16x128xf32>
    %198 = math.exp %197 : vector<16x128xf32>
    %cst_127 = arith.constant 1.000000e+00 : f32
    %199 = vector.broadcast %cst_127 : f32 to vector<16x128xf32>
    %200 = arith.addf %199, %198 : vector<16x128xf32>
    %201 = arith.divf %199, %200 : vector<16x128xf32>
    %c0_128 = arith.constant 0 : index
    %c0_129 = arith.constant 0 : index
    %202 = vector.load %arg9[%c0_128, %c0_129] : memref<16x128xf32, #tpu.memory_space<vmem>>, vector<16x128xf32>
    tpu.vector_store %arg9[%c0_128, %c0_129], %201 {strides = array<i32>} : memref<16x128xf32, #tpu.memory_space<vmem>>, vector<16x128xf32>,
    return
  }
}

</mosaic_0001>

<bundles_post_ra>
// kernel: detr_forward.1
= control target key start
LH: loop header
LB: loop body
LE: loop exit
PB: predicated region body
PF: predicated region fallthrough
CT: control target
= control target key end

     0   :  { %vm120_vm0 = vcmask 261120   ;;  %s2424_s4 = inlined_call_operand.vmem [shape: bf16[15,32,32], index: 4, kind: input, shape index: {}]   ;;  %s2425_s0 = inlined_call_operand.vmem [shape: bf16[128,32], index: 0, kind: input, shape index: {}]   ;;  %s2426_s1 = inlined_call_operand.vmem [shape: f32[128,32], index: 1, kind: input, shape index: {}]   ;;  %s2427_s5 = inlined_call_operand.vmem [shape: f32[15,1,32], index: 5, kind: input, shape index: {}]   ;;  %s2428_s2 = inlined_call_operand.vmem [shape: f32[16,32], index: 2, kind: input, shape index: {}]   ;;  %s2429_s3 = inlined_call_operand.vmem [shape: f32[16,128], index: 3, kind: input, shape index: {}]   ;;  %s2430_s6 = inlined_call_operand.vmem [shape: bf16[2,32,128], index: 6, kind: input, shape index: {}]   ;;  %s2431_s7 = inlined_call_operand.vmem [shape: f32[2,1,128], index: 7, kind: input, shape index: {}]   ;;  %s2432_s8 = inlined_call_operand.vmem [shape: f32[16,128], index: 8, kind: output, shape index: {0}]   ;;  %s2433_s9 = inlined_call_operand.vmem [shape: f32[16,128], index: 9, kind: output, shape index: {1}]  }
   0x1   :  { %v1718_v0 = vld [vmem:[%s2424_s4 + $0x8] sm:$0xff]  ;;  %v1717_v1 = vld [vmem:[%s2424_s4] sm:$0xff]  ;;  %v1711_v4 = vld [vmem:[%s2425_s0 + $0x10] sm:$0xff] }
   0x2   :  { %151 = vmatpush.bf16.msra.mxu0 %v1718_v0  ;;  %v1709_v2 = vld [vmem:[%s2425_s0] sm:$0xff]  ;;  %v1710_v3 = vld [vmem:[%s2425_s0 + $0x8] sm:$0xff]  ;;  %v1712_v5 = vld [vmem:[%s2425_s0 + $0x18] sm:$0xff] }
   0x3   :  { %v1713_v6 = vld [vmem:[%s2425_s0 + $0x20] sm:$0xff]  ;;  %v1714_v7 = vld [vmem:[%s2425_s0 + $0x28] sm:$0xff]  ;;  %v1715_v8 = vld [vmem:[%s2425_s0 + $0x30] sm:$0xff] }
   0x4   :  { %v1722_v9 = vld [vmem:[%s2424_s4 + $0x28] sm:$0xff]  ;;  %v1724_v10 = vld [vmem:[%s2424_s4 + $0x38] sm:$0xff]  ;;  %v1721_v11 = vld [vmem:[%s2424_s4 + $0x20] sm:$0xff] }
   0x5   :  { %298 = vmatpush.bf16.msra.mxu2 %v1722_v9  ;;  %369 = vmatpush.bf16.msra.mxu3 %v1724_v10  ;;  %v1723_v12 = vld [vmem:[%s2424_s4 + $0x30] sm:$0xff]  ;;  %v1716_v13 = vld [vmem:[%s2425_s0 + $0x38] sm:$0xff]  ;;  %v52_v15 = vld [vmem:[%s2426_s1] sm:$0xff] }
   0x6   :  { %152 = vmatpush.bf16.msra.mxu0 %v1717_v1  ;;  %v53_v16 = vld [vmem:[%s2426_s1 + $0x8] sm:$0xff]  ;;  %v54_v22 = vld [vmem:[%s2426_s1 + $0x10] sm:$0xff]  ;;  %v55_v23 = vld [vmem:[%s2426_s1 + $0x18] sm:$0xff] }
   0x7   :  { %v56_v29 = vld [vmem:[%s2426_s1 + $0x20] sm:$0xff]  ;;  %v57_v30 = vld [vmem:[%s2426_s1 + $0x28] sm:$0xff]  ;;  %v58_v36 = vld [vmem:[%s2426_s1 + $0x30] sm:$0xff] }
   0x8   :  { %v59_v37 = vld [vmem:[%s2426_s1 + $0x38] sm:$0xff]  ;;  %v60_v43 = vld [vmem:[%s2426_s1 + $0x40] sm:$0xff]  ;;  %v61_v44 = vld [vmem:[%s2426_s1 + $0x48] sm:$0xff] }
   0x9   :  { %1435 = vmatmul.msk.bf16.vlgmr.msra.gmra.mxu0 %vm120_vm0, %v1709_v2  ;;  %299 = vmatpush.bf16.msra.mxu2 %v1721_v11  ;;  %v62_v50 = vld [vmem:[%s2426_s1 + $0x50] sm:$0xff]  ;;  %v63_v51 = vld [vmem:[%s2426_s1 + $0x58] sm:$0xff]  ;;  %v64_v59 = vld [vmem:[%s2426_s1 + $0x60] sm:$0xff] }
   0xa   :  { %370 = vmatpush.bf16.msra.mxu3 %v1723_v12  ;;  %v1732_v56 = vld [vmem:[%s2424_s4 + $0x78] sm:$0xff]  ;;  %v1731_v57 = vld [vmem:[%s2424_s4 + $0x70] sm:$0xff]  ;;  %v65_v60 = vld [vmem:[%s2426_s1 + $0x68] sm:$0xff] }
   0xb   :  { %v66_v2 = vld [vmem:[%s2426_s1 + $0x70] sm:$0xff]  ;;  %v1720_v9 = vld [vmem:[%s2424_s4 + $0x18] sm:$0xff]  ;;  %v2012_v11 = vld [vmem:[%s2427_s5 + $0x2] ss:$0 sm:$0xff] }
   0xc   :  { %238 = vmatpush.bf16.msra.mxu1 %v1720_v9  ;;  %v1719_v10 = vld [vmem:[%s2424_s4 + $0x10] sm:$0xff] }
   0xd   :  { %688 = vmatpush.bf16.msrb.mxu2 %v1732_v56 }
  0x10   :  { %239 = vmatpush.bf16.msra.mxu1 %v1719_v10 }
  0x11   :  { %689 = vmatpush.bf16.msrb.mxu2 %v1731_v57 }
  0x19   :  { %1436 = vmatmul.msk.bf16.gmra.mxu0 %vm120_vm0, %v1710_v3  ;;  %v67_v3 = vld [vmem:[%s2426_s1 + $0x78] sm:$0xff] }
  0x29   :  { %1437 = vmatmul.msk.bf16.gmra.mxu0 %vm120_vm0, %v1711_v4 }
  0x39   :  { %1438 = vmatmul.msk.bf16.gmra.mxu0 %vm120_vm0, %v1712_v5 }
  0x49   :  { %1439 = vmatmul.msk.bf16.gmra.mxu0 %vm120_vm0, %v1713_v6 }
  0x59   :  { %1440 = vmatmul.msk.bf16.gmra.mxu0 %vm120_vm0, %v1714_v7 }
  0x69   :  { %1441 = vmatmul.msk.bf16.gmra.mxu0 %vm120_vm0, %v1715_v8 }
  0x79   :  { %1442 = vmatmul.msk.bf16.gmra.mxu0 %vm120_vm0, %v1716_v13  ;;  %v2017_v13 = vld [vmem:[%s2428_s2] sm:$0xff] }
  0x86   :  { %v154_v14 = vpop.f32.mrf.mxu0 }
  0x87   :  { %v155_v18 = vadd.f32 %v154_v14, %v52_v15  ;;  %v2022_v14 = vld [vmem:[%s2428_s2 + $0x8] sm:$0xff] }
  0x8e   :  { %v156_v17 = vpop.f32.mrf.mxu0 }
  0x8f   :  { %v157_v19 = vadd.f32 %v156_v17, %v53_v16  ;;  %v198_v17 = vpack.c.bf16 %v2022_v14, %v2017_v13 }
  0x91   :  { %v1905_v20 = vpack.c.bf16 %v157_v19, %v155_v18  ;;  %1456 = vmatmul.msk.bf16.vlgmr.msra.gmra.mxu1 %vm120_vm0, %v198_v17 }
  0x93   :  { %1470 = vmatmul.msk.bf16.vlgmr.msra.gmra.mxu2 %vm120_vm0, %v1905_v20  ;;  %1491 = vmatmul.msk.bf16.vlgmr.msra.gmra.mxu3 %vm120_vm0, %v1905_v20 }
  0x96   :  { %v159_v21 = vpop.f32.mrf.mxu0 }
  0x97   :  { %v160_v25 = vadd.f32 %v159_v21, %v54_v22 }
  0x9e   :  { %v161_v24 = vpop.f32.mrf.mxu0 }
  0x9f   :  { %v162_v26 = vadd.f32 %v161_v24, %v55_v23 }
  0xa1   :  { %v1917_v27 = vpack.c.bf16 %v162_v26, %v160_v25 }
  0xa3   :  { %1471 = vmatmul.msk.bf16.gmra.mxu2 %vm120_vm0, %v1917_v27  ;;  %1492 = vmatmul.msk.bf16.gmra.mxu3 %vm120_vm0, %v1917_v27 }
  0xa6   :  { %v164_v28 = vpop.f32.mrf.mxu0 }
  0xa7   :  { %v165_v32 = vadd.f32 %v164_v28, %v56_v29 }
  0xae   :  { %v166_v31 = vpop.f32.mrf.mxu0 }
  0xaf   :  { %v167_v33 = vadd.f32 %v166_v31, %v57_v30 }
  0xb1   :  { %v1929_v34 = vpack.c.bf16 %v167_v33, %v165_v32 }
  0xb3   :  { %1472 = vmatmul.msk.bf16.gmra.mxu2 %vm120_vm0, %v1929_v34  ;;  %1493 = vmatmul.msk.bf16.gmra.mxu3 %vm120_vm0, %v1929_v34 }
  0xb6   :  { %v169_v35 = vpop.f32.mrf.mxu0 }
  0xb7   :  { %v170_v39 = vadd.f32 %v169_v35, %v58_v36 }
  0xbe   :  { %v171_v38 = vpop.f32.mrf.mxu0 }
  0xbf   :  { %v172_v40 = vadd.f32 %v171_v38, %v59_v37 }
  0xc1   :  { %v1941_v41 = vpack.c.bf16 %v172_v40, %v170_v39 }
  0xc3   :  { %1473 = vmatmul.msk.bf16.gmra.mxu2 %vm120_vm0, %v1941_v41  ;;  %1494 = vmatmul.msk.bf16.gmra.mxu3 %vm120_vm0, %v1941_v41 }
  0xc6   :  { %v174_v42 = vpop.f32.mrf.mxu0 }
  0xc7   :  { %v175_v46 = vadd.f32 %v174_v42, %v60_v43 }
  0xce   :  { %v176_v45 = vpop.f32.mrf.mxu0 }
  0xcf   :  { %v177_v47 = vadd.f32 %v176_v45, %v61_v44 }
  0xd1   :  { %v1953_v48 = vpack.c.bf16 %v177_v47, %v175_v46 }
  0xd3   :  { %1474 = vmatmul.msk.bf16.gmra.mxu2 %vm120_vm0, %v1953_v48  ;;  %1495 = vmatmul.msk.bf16.gmra.mxu3 %vm120_vm0, %v1953_v48 }
  0xd6   :  { %v179_v49 = vpop.f32.mrf.mxu0 }
  0xd7   :  { %v180_v53 = vadd.f32 %v179_v49, %v62_v50 }
  0xde   :  { %v181_v52 = vpop.f32.mrf.mxu0 }
  0xdf   :  { %v182_v54 = vadd.f32 %v181_v52, %v63_v51 }
  0xe1   :  { %v1965_v55 = vpack.c.bf16 %v182_v54, %v180_v53 }
  0xe3   :  { %1475 = vmatmul.msk.bf16.gmra.mxu2 %vm120_vm0, %v1965_v55  ;;  %1496 = vmatmul.msk.bf16.gmra.mxu3 %vm120_vm0, %v1965_v55 }
  0xe6   :  { %v184_v58 = vpop.f32.mrf.mxu0 }
  0xe7   :  { %v185_v62 = vadd.f32 %v184_v58, %v64_v59 }
  0xee   :  { %v186_v61 = vpop.f32.mrf.mxu0 }
  0xef   :  { %v187_v63 = vadd.f32 %v186_v61, %v65_v60 }
  0xf1   :  { %v1983_v0 = vpack.c.bf16 %v187_v63, %v185_v62 }
  0xf3   :  { %1476 = vmatmul.msk.bf16.gmra.mxu2 %vm120_vm0, %v1983_v0  ;;  %1497 = vmatmul.msk.bf16.gmra.mxu3 %vm120_vm0, %v1983_v0 }
  0xf6   :  { %v189_v1 = vpop.f32.mrf.mxu0 }
  0xf7   :  { %v190_v5 = vadd.f32 %v189_v1, %v66_v2 }
  0xfe   :  { %v191_v4 = vpop.f32.mrf.mxu0 }
  0xff   :  { %v192_v6 = vadd.f32 %v191_v4, %v67_v3 }
 0x101   :  { %v1995_v7 = vpack.c.bf16 %v192_v6, %v190_v5  ;;  %v2098_v5 = vld [vmem:[%s2427_s5 + $0x7] ss:$0 sm:$0xff] }
 0x103   :  { %1477 = vmatmul.msk.bf16.gmra.mxu2 %vm120_vm0, %v1995_v7  ;;  %1498 = vmatmul.msk.bf16.gmra.mxu3 %vm120_vm0, %v1995_v7 }
 0x113   :  { %1562 = vmatmul.msk.bf16.vlgmr.msrb.gmra.mxu2 %vm120_vm0, %v1905_v20 }
 0x116   :  { %v301_v8 = vpop.f32.mrf.mxu2  ;;  %v2037_v21 = vpop.f32.mrf.mxu3 }
 0x117   :  { %v2025_v15 = vadd.f32 %v2012_v11, %v301_v8 }
 0x11e   :  { %v303_v12 = vpop.f32.mrf.mxu2  ;;  %v2049_v28 = vpop.f32.mrf.mxu3 }
 0x11f   :  { %v2028_v16 = vadd.f32 %v2012_v11, %v303_v12 }
 0x121   :  { %v413_v18 = vpack.c.bf16 %v2028_v16, %v2025_v15 }
 0x123   :  { %1563 = vmatmul.msk.bf16.gmra.mxu2 %vm120_vm0, %v1917_v27 }
 0x126   :  { %v306_v19 = vpop.f32.mrf.mxu2  ;;  %v2059_v33 = vpop.f32.mrf.mxu3 }
 0x127   :  { %v2040_v23 = vadd.f32 %v2012_v11, %v306_v19 }
 0x12e   :  { %v308_v22 = vpop.f32.mrf.mxu2  ;;  %v2063_v36 = vpop.f32.mrf.mxu3 }
 0x12f   :  { %v2043_v24 = vadd.f32 %v2012_v11, %v308_v22 }
 0x131   :  { %v414_v25 = vpack.c.bf16 %v2043_v24, %v2040_v23  ;;  %v425_v23 = vsel %vm120_vm0, %v413_v18, 0 }
 0x133   :  { %1564 = vmatmul.msk.bf16.gmra.mxu2 %vm120_vm0, %v1929_v34 }
 0x136   :  { %v311_v26 = vpop.f32.mrf.mxu2  ;;  %v2069_v42 = vpop.f32.mrf.mxu3 }
 0x137   :  { %v2052_v30 = vadd.f32 %v2012_v11, %v311_v26 }
 0x13e   :  { %v313_v29 = vpop.f32.mrf.mxu2  ;;  %v2071_v45 = vpop.f32.mrf.mxu3 }
 0x13f   :  { %v2055_v31 = vadd.f32 %v2012_v11, %v313_v29 }
 0x141   :  { %v415_v32 = vpack.c.bf16 %v2055_v31, %v2052_v30  ;;  %v1752_v31 = vld [vmem:[%s2427_s5 + $0x3] ss:$0 sm:$0xff] }
 0x143   :  { %1565 = vmatmul.msk.bf16.gmra.mxu2 %vm120_vm0, %v1941_v41 }
 0x146   :  { %v316_v35 = vpop.f32.mrf.mxu2  ;;  %v2075_v47 = vpop.f32.mrf.mxu3 }
 0x147   :  { %v317_v38 = vadd.f32 %v2012_v11, %v316_v35 }
 0x14e   :  { %v318_v37 = vpop.f32.mrf.mxu2  ;;  %v2079_v50 = vpop.f32.mrf.mxu3 }
 0x14f   :  { %v319_v39 = vadd.f32 %v2012_v11, %v318_v37 }
 0x151   :  { %v416_v40 = vpack.c.bf16 %v319_v39, %v317_v38 }
 0x153   :  { %1566 = vmatmul.msk.bf16.gmra.mxu2 %vm120_vm0, %v1953_v48 }
 0x156   :  { %v321_v43 = vpop.f32.mrf.mxu2  ;;  %v2081_v52 = vpop.f32.mrf.mxu3 }
 0x157   :  { %v322_v35 = vadd.f32 %v2012_v11, %v321_v43  ;;  %v393_v18 = vadd.f32 %v1752_v31, %v2081_v52  ;;  %v378_v52 = vadd.f32 %v1752_v31, %v2059_v33  ;;  %v1727_v33 = vld [vmem:[%s2424_s4 + $0x50] sm:$0xff] }
 0x15e   :  { %v323_v44 = vpop.f32.mrf.mxu2  ;;  %v2085_v56 = vpop.f32.mrf.mxu3 }
 0x15f   :  { %v324_v26 = vadd.f32 %v2012_v11, %v323_v44  ;;  %v395_v15 = vadd.f32 %v1752_v31, %v2085_v56 }
 0x161   :  { %v417_v39 = vpack.c.bf16 %v324_v26, %v322_v35 }
 0x163   :  { %1567 = vmatmul.msk.bf16.gmra.mxu2 %vm120_vm0, %v1965_v55 }
 0x166   :  { %v326_v46 = vpop.f32.mrf.mxu2  ;;  %v2089_v61 = vpop.f32.mrf.mxu3 }
 0x167   :  { %v327_v9 = vadd.f32 %v2012_v11, %v326_v46  ;;  %v437_v46 = vsel %vm120_vm0, %v417_v39, 0 }
 0x16e   :  { %v328_v49 = vpop.f32.mrf.mxu2  ;;  %v399_v8 = vpop.f32.mrf.mxu3 }
 0x16f   :  { %v329_v4 = vadd.f32 %v2012_v11, %v328_v49 }
 0x171   :  { %v418_v19 = vpack.c.bf16 %v329_v4, %v327_v9  ;;  %v1754_v4 = vld [vmem:[%s2427_s5 + $0x1] ss:$0 sm:$0xff] }
 0x173   :  { %1568 = vmatmul.msk.bf16.gmra.mxu2 %vm120_vm0, %v1983_v0  ;;  %v440_v29 = vsel %vm120_vm0, %v418_v19, 0 }
 0x176   :  { %v331_v51 = vpop.f32.mrf.mxu2  ;;  %v402_v37 = vpop.f32.mrf.mxu3 }
 0x177   :  { %v332_v1 = vadd.f32 %v2012_v11, %v331_v51  ;;  %v403_v24 = vadd.f32 %v1752_v31, %v402_v37 }
 0x17e   :  { %v333_v53 = vpop.f32.mrf.mxu2 }
 0x17f   :  { %v334_v62 = vadd.f32 %v2012_v11, %v333_v53 }
 0x181   :  { %v419_v3 = vpack.c.bf16 %v334_v62, %v332_v1  ;;  %v428_v1 = vsel %vm120_vm0, %v414_v25, 0 }
 0x183   :  { %1569 = vmatmul.msk.bf16.gmra.mxu2 %vm120_vm0, %v1995_v7  ;;  %v443_v6 = vsel %vm120_vm0, %v419_v3, 0 }
 0x186   :  { %v336_v54 = vpop.f32.mrf.mxu2 }
 0x187   :  { %v337_v58 = vadd.f32 %v2012_v11, %v336_v54  ;;  %v404_v54 = vpop.f32.mrf.mxu3 }
 0x188   :  { %v405_v9 = vadd.f32 %v1752_v31, %v404_v54 }
 0x18a   :  { %v491_v35 = vpack.c.bf16 %v405_v9, %v403_v24 }
 0x18e   :  { %v338_v57 = vpop.f32.mrf.mxu2 }
 0x18f   :  { %v339_v59 = vadd.f32 %v2012_v11, %v338_v57  ;;  %v434_v57 = vsel %vm120_vm0, %v416_v40, 0  ;;  %v407_v43 = vpop.f32.mrf.mxu3 }
 0x190   :  { %v408_v3 = vadd.f32 %v1752_v31, %v407_v43 }
 0x191   :  { %v420_v60 = vpack.c.bf16 %v339_v59, %v337_v58  ;;  %v431_v58 = vsel %vm120_vm0, %v415_v32, 0 }
 0x193   :  { %v446_v63 = vsel %vm120_vm0, %v420_v60, 0 }
 0x194   :  { %448 = vmatpush.bf16.xpose.msrb.mxu1 %v446_v63  ;;  %v241_v63 = vpop.f32.mrf.mxu1 }
 0x195   :  { %v242_v25 = vadd.f32 %v1754_v4, %v241_v63 }
 0x196   :  { %v691_v2 = vpop.f32.mrf.mxu2 }
 0x197   :  { %v2103_v12 = vadd.f32 %v2098_v5, %v691_v2  ;;  %v409_v30 = vpop.f32.mrf.mxu3 }
 0x198   :  { %v410_v2 = vadd.f32 %v1752_v31, %v409_v30  ;;  %v373_v30 = vadd.f32 %v1752_v31, %v2037_v21 }
 0x19c   :  { %449 = vmatpush.bf16.xpose.msrb.mxu1 %v443_v6  ;;  %v243_v6 = vpop.f32.mrf.mxu1 }
 0x19d   :  { %v244_v19 = vadd.f32 %v1754_v4, %v243_v6 }
 0x19e   :  { %v693_v10 = vpop.f32.mrf.mxu2 }
 0x19f   :  { %v2106_v17 = vadd.f32 %v2098_v5, %v693_v10  ;;  %v492_v10 = vpack.c.bf16 %v410_v2, %v408_v3 }
 0x1a1   :  { %v804_v22 = vpack.c.bf16 %v2106_v17, %v2103_v12 }
 0x1a4   :  { %450 = vmatpush.bf16.xpose.msrb.mxu1 %v440_v29  ;;  %v400_v29 = vadd.f32 %v1752_v31, %v399_v8  ;;  %v390_v8 = vadd.f32 %v1752_v31, %v2079_v50 }
 0x1a6   :  { %v696_v38 = vpop.f32.mrf.mxu2 }
 0x1a7   :  { %v2115_v51 = vadd.f32 %v2098_v5, %v696_v38 }
 0x1ac   :  { %451 = vmatpush.bf16.xpose.msrb.mxu1 %v437_v46  ;;  %v398_v46 = vadd.f32 %v1752_v31, %v2089_v61  ;;  %v385_v61 = vadd.f32 %v1752_v31, %v2071_v45 }
 0x1ae   :  { %v698_v49 = vpop.f32.mrf.mxu2  ;;  %v490_v16 = vpack.c.bf16 %v400_v29, %v398_v46 }
 0x1af   :  { %v2118_v53 = vadd.f32 %v2098_v5, %v698_v49  ;;  %v412_v49 = vpack.c.bf16 %v244_v19, %v242_v25 }
 0x1b1   :  { %v805_v44 = vpack.c.bf16 %v2118_v53, %v2115_v51  ;;  %v2195_v51 = vld [vmem:[%s2429_s3 + $0x8] sm:$0xff] }
 0x1b4   :  { %452 = vmatpush.bf16.xpose.msrb.mxu1 %v434_v57  ;;  %v489_v57 = vpack.c.bf16 %v395_v15, %v393_v18 }
 0x1b6   :  { %v701_v11 = vpop.f32.mrf.mxu2 }
 0x1b7   :  { %v2128_v60 = vadd.f32 %v2098_v5, %v701_v11  ;;  %v388_v11 = vadd.f32 %v1752_v31, %v2075_v47 }
 0x1b9   :  { %v488_v43 = vpack.c.bf16 %v390_v8, %v388_v11 }
 0x1bc   :  { %453 = vmatpush.bf16.xpose.msrb.mxu1 %v431_v58  ;;  %v383_v58 = vadd.f32 %v1752_v31, %v2069_v42  ;;  %v1728_v42 = vld [vmem:[%s2424_s4 + $0x58] sm:$0xff] }
 0x1bd   :  { %581 = vmatpush.bf16.msrb.mxu0 %v1728_v42 }
 0x1be   :  { %v703_v59 = vpop.f32.mrf.mxu2  ;;  %v487_v63 = vpack.c.bf16 %v385_v61, %v383_v58  ;;  %v1726_v61 = vld [vmem:[%s2424_s4 + $0x48] sm:$0xff] }
 0x1bf   :  { %v2131_v62 = vadd.f32 %v2098_v5, %v703_v59  ;;  %v380_v59 = vadd.f32 %v1752_v31, %v2063_v36  ;;  %v1730_v58 = vld [vmem:[%s2424_s4 + $0x68] sm:$0xff] }
 0x1c1   :  { %v806_v40 = vpack.c.bf16 %v2131_v62, %v2128_v60  ;;  %v486_v50 = vpack.c.bf16 %v380_v59, %v378_v52  ;;  %582 = vmatpush.bf16.msrb.mxu0 %v1727_v33 }
 0x1c4   :  { %454 = vmatpush.bf16.xpose.msrb.mxu1 %v428_v1  ;;  %v375_v1 = vadd.f32 %v1752_v31, %v2049_v28 }
 0x1c6   :  { %v706_v32 = vpop.f32.mrf.mxu2 }
 0x1c7   :  { %v707_v38 = vadd.f32 %v2098_v5, %v706_v32  ;;  %v485_v32 = vpack.c.bf16 %v375_v1, %v373_v30 }
 0x1cc   :  { %455 = vmatpush.bf16.xpose.msrb.mxu1 %v425_v23 }
 0x1ce   :  { %v708_v26 = vpop.f32.mrf.mxu2 }
 0x1cf   :  { %v709_v39 = vadd.f32 %v2098_v5, %v708_v26 }
 0x1d1   :  { %v807_v54 = vpack.c.bf16 %v709_v39, %v707_v38 }
 0x1d3   :  { %1499 = vmatmul.msk.bf16.vlgmr.msrb.gmra.mxu1 %vm120_vm0, %v412_v49 }
 0x1d4   :  { %493 = vmatpush.bf16.msra.mxu1 %v492_v10 }
 0x1d6   :  { %v711_v37 = vpop.f32.mrf.mxu2 }
 0x1d7   :  { %v712_v26 = vadd.f32 %v2098_v5, %v711_v37 }
 0x1d8   :  { %494 = vmatpush.bf16.msra.mxu1 %v491_v35 }
 0x1dc   :  { %495 = vmatpush.bf16.msra.mxu1 %v490_v16 }
 0x1de   :  { %v713_v56 = vpop.f32.mrf.mxu2 }
 0x1df   :  { %v714_v25 = vadd.f32 %v2098_v5, %v713_v56  ;;  %v1729_v56 = vld [vmem:[%s2424_s4 + $0x60] sm:$0xff] }
 0x1e0   :  { %496 = vmatpush.bf16.msra.mxu1 %v489_v57 }
 0x1e1   :  { %v808_v29 = vpack.c.bf16 %v714_v25, %v712_v26 }
 0x1e4   :  { %497 = vmatpush.bf16.msra.mxu1 %v488_v43  ;;  %v1725_v43 = vld [vmem:[%s2424_s4 + $0x40] sm:$0xff] }
 0x1e6   :  { %v716_v47 = vpop.f32.mrf.mxu2 }
 0x1e7   :  { %v717_v24 = vadd.f32 %v2098_v5, %v716_v47 }
 0x1e8   :  { %498 = vmatpush.bf16.msra.mxu1 %v487_v63 }
 0x1ec   :  { %499 = vmatpush.bf16.msra.mxu1 %v486_v50  ;;  %v1755_v50 = vld [vmem:[%s2427_s5 + $0x4] ss:$0 sm:$0xff] }
 0x1ee   :  { %v718_v45 = vpop.f32.mrf.mxu2 }
 0x1ef   :  { %v719_v10 = vadd.f32 %v2098_v5, %v718_v45 }
 0x1f0   :  { %500 = vmatpush.bf16.msra.mxu1 %v485_v32 }
 0x1f1   :  { %v809_v19 = vpack.c.bf16 %v719_v10, %v717_v24 }
 0x1f4   :  { %539 = vmatpush.bf16.msrb.mxu1 %v1726_v61 }
 0x1f6   :  { %v721_v36 = vpop.f32.mrf.mxu2 }
 0x1f7   :  { %v722_v9 = vadd.f32 %v2098_v5, %v721_v36 }
 0x1f8   :  { %540 = vmatpush.bf16.msrb.mxu1 %v1725_v43 }
 0x1fe   :  { %v723_v28 = vpop.f32.mrf.mxu2 }
 0x1ff   :  { %v724_v4 = vadd.f32 %v2098_v5, %v723_v28  ;;  %v1756_v28 = vld [vmem:[%s2427_s5 + $0x6] ss:$0 sm:$0xff] }
 0x201   :  { %v810_v23 = vpack.c.bf16 %v724_v4, %v722_v9 }
 0x206   :  { %v726_v2 = vpop.f32.mrf.mxu2 }
 0x207   :  { %v727_v21 = vadd.f32 %v2098_v5, %v726_v2 }
 0x20e   :  { %v728_v3 = vpop.f32.mrf.mxu2 }
 0x20f   :  { %v729_v31 = vadd.f32 %v2098_v5, %v728_v3  ;;  %v2189_v5 = vld [vmem:[%s2429_s3] sm:$0xff] }
 0x211   :  { %v811_v6 = vpack.c.bf16 %v729_v31, %v727_v21 }
 0x213   :  { %812 = vmatpush.bf16.msra.mxu0 %v811_v6 }
 0x217   :  { %813 = vmatpush.bf16.msra.mxu0 %v810_v23 }
 0x21b   :  { %814 = vmatpush.bf16.msra.mxu0 %v809_v19 }
 0x21f   :  { %815 = vmatpush.bf16.msra.mxu0 %v808_v29 }
 0x223   :  { %816 = vmatpush.bf16.msra.mxu0 %v807_v54 }
 0x227   :  { %817 = vmatpush.bf16.msra.mxu0 %v806_v40 }
 0x22b   :  { %818 = vmatpush.bf16.msra.mxu0 %v805_v44 }
 0x22f   :  { %819 = vmatpush.bf16.msra.mxu0 %v804_v22 }
 0x250   :  { %v457_v35 = vpop.f32.mrf.mxu1 }
 0x251   :  { %v462_v38 = vmul.f32 0.17677669, %v457_v35 }
 0x253   :  { %v464_v39 = vadd.f32 %v462_v38, %v2189_v5 }
 0x255   :  { %466 = vmax.xlane.f32.xlu0 %v464_v39 }
 0x258   :  { %v459_v60 = vpop.f32.mrf.mxu1 }
 0x259   :  { %v463_v53 = vmul.f32 0.17677669, %v459_v60 }
 0x25b   :  { %v465_v12 = vadd.f32 %v463_v53, %v2195_v51 }
 0x25d   :  { %468 = vmax.xlane.f32.xlu0 %v465_v12 }
 0x2c8   :  { %v467_v17 = vpop.xlane.xlu0 %466 }
 0x2c9   :  { %v470_v22 = vsub.f32 %v464_v39, %v467_v17 }
 0x2cb   :  { %v472_v44 = vmul.f32 1.442695, %v470_v22 }
 0x2cd   :  { %1767 = vpow2.f32 %v472_v44 }
 0x2d0   :  { %v469_v62 = vpop.xlane.xlu0 %468 }
 0x2d1   :  { %v471_v40 = vsub.f32 %v465_v12, %v469_v62 }
 0x2d3   :  { %v1768_v46 = vpop.eup %1767  ;;  %v474_v49 = vmul.f32 1.442695, %v471_v40 }
 0x2d4   :  { %476 = vadd.xlane.f32.xlu1 %v1768_v46 }
 0x2d5   :  { %1769 = vpow2.f32 %v474_v49 }
 0x2db   :  { %v1770_v54 = vpop.eup %1769 }
 0x2dc   :  { %478 = vadd.xlane.f32.xlu1 %v1770_v54 }
 0x347   :  { %v477_v15 = vpop.xlane.xlu1 %476 }
 0x348   :  { %1771 = vrcp.f32 %v477_v15 }
 0x34e   :  { %v1772_v18 = vpop.eup %1771 }
 0x34f   :  { %v479_v16 = vpop.xlane.xlu1 %478  ;;  %v482_v8 = vmul.f32 %v1772_v18, %v1768_v46 }
 0x350   :  { %1773 = vrcp.f32 %v479_v16 }
 0x356   :  { %v1774_v37 = vpop.eup %1773 }
 0x357   :  { %v483_v57 = vmul.f32 %v1774_v37, %v1770_v54 }
 0x359   :  { %v484_v11 = vpack.c.bf16 %v483_v57, %v482_v8 }
 0x35b   :  { %501 = vmatmul.bf16.vlgmr.msra.gmra.mxu1 %v484_v11 }
 0x35c   :  { %617 = vmatpush.bf16.msra.mxu1 %v1730_v58 }
 0x360   :  { %618 = vmatpush.bf16.msra.mxu1 %v1729_v56 }
 0x3d8   :  { %v502_v59 = vpop.f32.mrf.mxu1 }
 0x3e0   :  { %v504_v63 = vpop.f32.mrf.mxu1 }
 0x3e1   :  { %v507_v52 = vpack.c.bf16 %v504_v63, %v502_v59 }
 0x3e3   :  { %1513 = vmatmul.msk.bf16.vlgmr.msrb.gmra.mxu1 %vm120_vm0, %v507_v52 }
 0x3f3   :  { %1541 = vmatmul.msk.bf16.vlgmr.msra.gmra.mxu1 %vm120_vm0, %v1905_v20 }
 0x403   :  { %1542 = vmatmul.msk.bf16.gmra.mxu1 %vm120_vm0, %v1917_v27 }
 0x413   :  { %1543 = vmatmul.msk.bf16.gmra.mxu1 %vm120_vm0, %v1929_v34 }
 0x423   :  { %1544 = vmatmul.msk.bf16.gmra.mxu1 %vm120_vm0, %v1941_v41 }
 0x433   :  { %1545 = vmatmul.msk.bf16.gmra.mxu1 %vm120_vm0, %v1953_v48 }
 0x443   :  { %1546 = vmatmul.msk.bf16.gmra.mxu1 %vm120_vm0, %v1965_v55 }
 0x453   :  { %1547 = vmatmul.msk.bf16.gmra.mxu1 %vm120_vm0, %v1983_v0 }
 0x460   :  { %v542_v1 = vpop.f32.mrf.mxu1 }
 0x461   :  { %v543_v30 = vadd.f32 %v1755_v50, %v542_v1 }
 0x463   :  { %1548 = vmatmul.msk.bf16.gmra.mxu1 %vm120_vm0, %v1995_v7  ;;  %v2231_v42 = vadd.f32 %v543_v30, %v2017_v13 }
 0x468   :  { %v544_v47 = vpop.f32.mrf.mxu1 }
 0x469   :  { %v545_v32 = vadd.f32 %v1755_v50, %v544_v47 }
 0x46b   :  { %v2234_v45 = vadd.f32 %v545_v32, %v2022_v14  ;;  %v1757_v32 = vld [vmem:[%s2427_s5 + $0x5] ss:$0 sm:$0xff] }
 0x46d   :  { %v549_v33 = vpack.c.bf16 %v2234_v45, %v2231_v42 }
 0x46f   :  { %1527 = vmatmul.msk.bf16.vlgmr.msrb.gmra.mxu0 %vm120_vm0, %v549_v33 }
 0x470   :  { %v620_v36 = vpop.f32.mrf.mxu1 }
 0x471   :  { %v621_v3 = vadd.f32 %v1756_v28, %v620_v36 }
 0x478   :  { %v622_v2 = vpop.f32.mrf.mxu1 }
 0x479   :  { %v623_v21 = vadd.f32 %v1756_v28, %v622_v2 }
 0x47b   :  { %v732_v31 = vpack.c.bf16 %v623_v21, %v621_v3 }
 0x47d   :  { %v744_v33 = vsel %vm120_vm0, %v732_v31, 0 }
 0x480   :  { %v625_v4 = vpop.f32.mrf.mxu1 }
 0x481   :  { %v626_v6 = vadd.f32 %v1756_v28, %v625_v4 }
 0x488   :  { %v627_v13 = vpop.f32.mrf.mxu1 }
 0x489   :  { %v628_v9 = vadd.f32 %v1756_v28, %v627_v13 }
 0x48b   :  { %v733_v14 = vpack.c.bf16 %v628_v9, %v626_v6 }
 0x48d   :  { %v747_v30 = vsel %vm120_vm0, %v733_v14, 0 }
 0x490   :  { %v630_v10 = vpop.f32.mrf.mxu1 }
 0x491   :  { %v631_v24 = vadd.f32 %v1756_v28, %v630_v10 }
 0x498   :  { %v632_v23 = vpop.f32.mrf.mxu1 }
 0x499   :  { %v633_v25 = vadd.f32 %v1756_v28, %v632_v23 }
 0x49b   :  { %v734_v19 = vpack.c.bf16 %v633_v25, %v631_v24 }
 0x49d   :  { %v750_v1 = vsel %vm120_vm0, %v734_v19, 0 }
 0x4a0   :  { %v635_v26 = vpop.f32.mrf.mxu1 }
 0x4a1   :  { %v636_v35 = vadd.f32 %v1756_v28, %v635_v26 }
 0x4a8   :  { %v637_v29 = vpop.f32.mrf.mxu1 }
 0x4a9   :  { %v638_v38 = vadd.f32 %v1756_v28, %v637_v29  ;;  %v1738_v29 = vld [vmem:[%s2424_s4 + $0xa8] sm:$0xff] }
 0x4aa   :  { %936 = vmatpush.bf16.msrb.mxu0 %v1738_v29 }
 0x4ab   :  { %v735_v39 = vpack.c.bf16 %v638_v38, %v636_v35  ;;  %v1737_v35 = vld [vmem:[%s2424_s4 + $0xa0] sm:$0xff] }
 0x4ad   :  { %v753_v52 = vsel %vm120_vm0, %v735_v39, 0 }
 0x4ae   :  { %937 = vmatpush.bf16.msrb.mxu0 %v1737_v35 }
 0x4b0   :  { %v640_v60 = vpop.f32.mrf.mxu1 }
 0x4b1   :  { %v641_v12 = vadd.f32 %v1756_v28, %v640_v60 }
 0x4b8   :  { %v642_v53 = vpop.f32.mrf.mxu1 }
 0x4b9   :  { %v643_v17 = vadd.f32 %v1756_v28, %v642_v53 }
 0x4bb   :  { %v736_v22 = vpack.c.bf16 %v643_v17, %v641_v12 }
 0x4bd   :  { %v756_v63 = vsel %vm120_vm0, %v736_v22, 0 }
 0x4c0   :  { %v645_v44 = vpop.f32.mrf.mxu1 }
 0x4c1   :  { %v646_v58 = vadd.f32 %v1756_v28, %v645_v44  ;;  %v1734_v44 = vld [vmem:[%s2424_s4 + $0x88] sm:$0xff] }
 0x4c8   :  { %v647_v62 = vpop.f32.mrf.mxu1 }
 0x4c9   :  { %v648_v61 = vadd.f32 %v1756_v28, %v647_v62  ;;  %v1733_v62 = vld [vmem:[%s2424_s4 + $0x80] sm:$0xff] }
 0x4cb   :  { %v737_v56 = vpack.c.bf16 %v648_v61, %v646_v58 }
 0x4cd   :  { %v759_v59 = vsel %vm120_vm0, %v737_v56, 0 }
 0x4d0   :  { %v650_v40 = vpop.f32.mrf.mxu1 }
 0x4d1   :  { %v651_v57 = vadd.f32 %v1756_v28, %v650_v40 }
 0x4d8   :  { %v652_v46 = vpop.f32.mrf.mxu1 }
 0x4d9   :  { %v653_v37 = vadd.f32 %v1756_v28, %v652_v46 }
 0x4db   :  { %v738_v11 = vpack.c.bf16 %v653_v37, %v651_v57 }
 0x4dd   :  { %v762_v43 = vsel %vm120_vm0, %v738_v11, 0 }
 0x4e0   :  { %v655_v49 = vpop.f32.mrf.mxu1 }
 0x4e1   :  { %v656_v15 = vadd.f32 %v1756_v28, %v655_v49 }
 0x4e8   :  { %v657_v54 = vpop.f32.mrf.mxu1 }
 0x4e9   :  { %v658_v16 = vadd.f32 %v1756_v28, %v657_v54 }
 0x4eb   :  { %v739_v18 = vpack.c.bf16 %v658_v16, %v656_v15  ;;  %v1758_v15 = vld [vmem:[%s2427_s5 + $0xa] ss:$0 sm:$0xff] }
 0x4ec   :  { %v584_v50 = vpop.f32.mrf.mxu0 }
 0x4ed   :  { %v765_v8 = vsel %vm120_vm0, %v739_v18, 0  ;;  %v585_v28 = vadd.f32 %v1757_v32, %v584_v50 }
 0x4ee   :  { %767 = vmatpush.bf16.xpose.msrb.mxu3 %v765_v8 }
 0x4f4   :  { %v586_v47 = vpop.f32.mrf.mxu0 }
 0x4f5   :  { %v587_v36 = vadd.f32 %v1757_v32, %v586_v47 }
 0x4f6   :  { %768 = vmatpush.bf16.xpose.msrb.mxu3 %v762_v43 }
 0x4f7   :  { %v731_v2 = vpack.c.bf16 %v587_v36, %v585_v28 }
 0x4fe   :  { %769 = vmatpush.bf16.xpose.msrb.mxu3 %v759_v59 }
 0x506   :  { %770 = vmatpush.bf16.xpose.msrb.mxu3 %v756_v63 }
 0x50e   :  { %771 = vmatpush.bf16.xpose.msrb.mxu3 %v753_v52 }
 0x516   :  { %772 = vmatpush.bf16.xpose.msrb.mxu3 %v750_v1 }
 0x51e   :  { %773 = vmatpush.bf16.xpose.msrb.mxu3 %v747_v30 }
 0x526   :  { %774 = vmatpush.bf16.xpose.msrb.mxu3 %v744_v33 }
 0x52d   :  { %1570 = vmatmul.msk.bf16.vlgmr.msrb.gmra.mxu3 %vm120_vm0, %v731_v2 }
 0x52e   :  { %858 = vmatpush.bf16.msra.mxu3 %v1734_v44 }
 0x532   :  { %859 = vmatpush.bf16.msra.mxu3 %v1733_v62 }
 0x5b0   :  { %v776_v3 = vpop.f32.mrf.mxu3 }
 0x5b1   :  { %v781_v21 = vmul.f32 0.17677669, %v776_v3 }
 0x5b3   :  { %v783_v4 = vadd.f32 %v781_v21, %v2189_v5 }
 0x5b5   :  { %785 = vmax.xlane.f32.xlu2 %v783_v4 }
 0x5b8   :  { %v778_v13 = vpop.f32.mrf.mxu3 }
 0x5b9   :  { %v782_v6 = vmul.f32 0.17677669, %v778_v13 }
 0x5bb   :  { %v784_v9 = vadd.f32 %v782_v6, %v2195_v51 }
 0x5bd   :  { %787 = vmax.xlane.f32.xlu2 %v784_v9 }
 0x628   :  { %v786_v14 = vpop.xlane.xlu2 %785 }
 0x629   :  { %v789_v10 = vsub.f32 %v783_v4, %v786_v14 }
 0x62b   :  { %v791_v23 = vmul.f32 1.442695, %v789_v10  ;;  %v1735_v10 = vld [vmem:[%s2424_s4 + $0x90] sm:$0xff] }
 0x62d   :  { %1775 = vpow2.f32 %v791_v23  ;;  %v1740_v23 = vld [vmem:[%s2424_s4 + $0xb8] sm:$0xff] }
 0x630   :  { %v788_v31 = vpop.xlane.xlu2 %787 }
 0x631   :  { %v790_v24 = vsub.f32 %v784_v9, %v788_v31  ;;  %v1736_v9 = vld [vmem:[%s2424_s4 + $0x98] sm:$0xff] }
 0x632   :  { %900 = vmatpush.bf16.msrb.mxu3 %v1736_v9 }
 0x633   :  { %v1776_v25 = vpop.eup %1775  ;;  %v793_v19 = vmul.f32 1.442695, %v790_v24  ;;  %v1739_v24 = vld [vmem:[%s2424_s4 + $0xb0] sm:$0xff] }
 0x634   :  { %795 = vadd.xlane.f32.xlu0 %v1776_v25 }
 0x635   :  { %1777 = vpow2.f32 %v793_v19 }
 0x636   :  { %901 = vmatpush.bf16.msrb.mxu3 %v1735_v10 }
 0x63b   :  { %v1778_v26 = vpop.eup %1777 }
 0x63c   :  { %797 = vadd.xlane.f32.xlu1 %v1778_v26 }
 0x6a7   :  { %v796_v38 = vpop.xlane.xlu0 %795 }
 0x6a8   :  { %1779 = vrcp.f32 %v796_v38 }
 0x6ae   :  { %v1780_v60 = vpop.eup %1779 }
 0x6af   :  { %v798_v39 = vpop.xlane.xlu1 %797  ;;  %v801_v12 = vmul.f32 %v1780_v60, %v1776_v25 }
 0x6b0   :  { %1781 = vrcp.f32 %v798_v39 }
 0x6b6   :  { %v1782_v53 = vpop.eup %1781 }
 0x6b7   :  { %v802_v17 = vmul.f32 %v1782_v53, %v1778_v26 }
 0x6b9   :  { %v803_v22 = vpack.c.bf16 %v802_v17, %v801_v12  ;;  %v1759_v12 = vld [vmem:[%s2427_s5 + $0x8] ss:$0 sm:$0xff] }
 0x6bb   :  { %820 = vmatmul.bf16.vlgmr.msra.gmra.mxu0 %v803_v22 }
 0x6cb   :  { %1612 = vmatmul.msk.bf16.vlgmr.msrb.gmra.mxu0 %vm120_vm0, %v1905_v20 }
 0x6db   :  { %1613 = vmatmul.msk.bf16.gmra.mxu0 %vm120_vm0, %v1917_v27 }
 0x6eb   :  { %1614 = vmatmul.msk.bf16.gmra.mxu0 %vm120_vm0, %v1929_v34 }
 0x6fb   :  { %1615 = vmatmul.msk.bf16.gmra.mxu0 %vm120_vm0, %v1941_v41 }
 0x70b   :  { %1616 = vmatmul.msk.bf16.gmra.mxu0 %vm120_vm0, %v1953_v48 }
 0x71b   :  { %1617 = vmatmul.msk.bf16.gmra.mxu0 %vm120_vm0, %v1965_v55 }
 0x72b   :  { %1618 = vmatmul.msk.bf16.gmra.mxu0 %vm120_vm0, %v1983_v0 }
 0x738   :  { %v821_v40 = vpop.f32.mrf.mxu0 }
 0x73b   :  { %1619 = vmatmul.msk.bf16.gmra.mxu0 %vm120_vm0, %v1995_v7 }
 0x740   :  { %v823_v46 = vpop.f32.mrf.mxu0 }
 0x741   :  { %v826_v49 = vpack.c.bf16 %v823_v46, %v821_v40 }
 0x743   :  { %1584 = vmatmul.msk.bf16.vlgmr.msra.gmra.mxu3 %vm120_vm0, %v826_v49 }
 0x744   :  { %1007 = vmatpush.bf16.msra.mxu3 %v1740_v23 }
 0x748   :  { %v939_v54 = vpop.f32.mrf.mxu0  ;;  %1008 = vmatpush.bf16.msra.mxu3 %v1739_v24 }
 0x749   :  { %v2288_v18 = vadd.f32 %v1758_v15, %v939_v54 }
 0x750   :  { %v941_v16 = vpop.f32.mrf.mxu0 }
 0x751   :  { %v2290_v37 = vadd.f32 %v1758_v15, %v941_v16 }
 0x753   :  { %v1051_v8 = vpack.c.bf16 %v2290_v37, %v2288_v18 }
 0x758   :  { %v944_v57 = vpop.f32.mrf.mxu0 }
 0x759   :  { %v2294_v61 = vadd.f32 %v1758_v15, %v944_v57 }
 0x760   :  { %v946_v11 = vpop.f32.mrf.mxu0 }
 0x761   :  { %v2296_v43 = vadd.f32 %v1758_v15, %v946_v11 }
 0x763   :  { %v1052_v58 = vpack.c.bf16 %v2296_v43, %v2294_v61  ;;  %v1063_v43 = vsel %vm120_vm0, %v1051_v8, 0 }
 0x768   :  { %v949_v56 = vpop.f32.mrf.mxu0 }
 0x769   :  { %v950_v63 = vadd.f32 %v1758_v15, %v949_v56 }
 0x770   :  { %v951_v59 = vpop.f32.mrf.mxu0 }
 0x771   :  { %v952_v52 = vadd.f32 %v1758_v15, %v951_v59 }
 0x773   :  { %v1053_v1 = vpack.c.bf16 %v952_v52, %v950_v63 }
 0x778   :  { %v954_v50 = vpop.f32.mrf.mxu0 }
 0x779   :  { %v955_v47 = vadd.f32 %v1758_v15, %v954_v50 }
 0x780   :  { %v956_v30 = vpop.f32.mrf.mxu0 }
 0x781   :  { %v957_v32 = vadd.f32 %v1758_v15, %v956_v30 }
 0x783   :  { %v1054_v33 = vpack.c.bf16 %v957_v32, %v955_v47 }
 0x788   :  { %v959_v36 = vpop.f32.mrf.mxu0 }
 0x789   :  { %v960_v2 = vadd.f32 %v1758_v15, %v959_v36 }
 0x790   :  { %v961_v28 = vpop.f32.mrf.mxu0 }
 0x791   :  { %v962_v3 = vadd.f32 %v1758_v15, %v961_v28 }
 0x793   :  { %v1055_v21 = vpack.c.bf16 %v962_v3, %v960_v2 }
 0x795   :  { %v1075_v61 = vsel %vm120_vm0, %v1055_v21, 0 }
 0x798   :  { %v964_v4 = vpop.f32.mrf.mxu0 }
 0x799   :  { %v965_v40 = vadd.f32 %v1758_v15, %v964_v4 }
 0x7a0   :  { %v966_v13 = vpop.f32.mrf.mxu0 }
 0x7a1   :  { %v967_v17 = vadd.f32 %v1758_v15, %v966_v13 }
 0x7a3   :  { %v1056_v49 = vpack.c.bf16 %v967_v17, %v965_v40 }
 0x7a5   :  { %v1078_v11 = vsel %vm120_vm0, %v1056_v49, 0 }
 0x7a8   :  { %v969_v6 = vpop.f32.mrf.mxu0 }
 0x7a9   :  { %v970_v60 = vadd.f32 %v1758_v15, %v969_v6 }
 0x7b0   :  { %v971_v14 = vpop.f32.mrf.mxu0 }
 0x7b1   :  { %v972_v35 = vadd.f32 %v1758_v15, %v971_v14 }
 0x7b3   :  { %v1057_v53 = vpack.c.bf16 %v972_v35, %v970_v60 }
 0x7b5   :  { %v1081_v44 = vsel %vm120_vm0, %v1057_v53, 0 }
 0x7b8   :  { %v974_v31 = vpop.f32.mrf.mxu0 }
 0x7b9   :  { %v975_v19 = vadd.f32 %v1758_v15, %v974_v31 }
 0x7c0   :  { %v976_v25 = vpop.f32.mrf.mxu0 }
 0x7c1   :  { %v977_v26 = vadd.f32 %v1758_v15, %v976_v25  ;;  %v1066_v15 = vsel %vm120_vm0, %v1052_v58, 0 }
 0x7c3   :  { %v1058_v29 = vpack.c.bf16 %v977_v26, %v975_v19 }
 0x7c5   :  { %v1084_v38 = vsel %vm120_vm0, %v1058_v29, 0 }
 0x7c6   :  { %v861_v39 = vpop.f32.mrf.mxu3  ;;  %1086 = vmatpush.bf16.xpose.msrb.mxu1 %v1084_v38 }
 0x7c7   :  { %v862_v22 = vadd.f32 %v1759_v12, %v861_v39 }
 0x7c9   :  { %v2318_v54 = vadd.f32 %v862_v22, %v2231_v42  ;;  %v1072_v42 = vsel %vm120_vm0, %v1054_v33, 0 }
 0x7ce   :  { %v863_v62 = vpop.f32.mrf.mxu3  ;;  %1087 = vmatpush.bf16.xpose.msrb.mxu1 %v1081_v44 }
 0x7cf   :  { %v864_v46 = vadd.f32 %v1759_v12, %v863_v62 }
 0x7d1   :  { %v2321_v16 = vadd.f32 %v864_v46, %v2234_v45  ;;  %v1069_v45 = vsel %vm120_vm0, %v1053_v1, 0 }
 0x7d3   :  { %v868_v57 = vpack.c.bf16 %v2321_v16, %v2318_v54 }
 0x7d5   :  { %1598 = vmatmul.msk.bf16.vlgmr.msrb.gmra.mxu3 %vm120_vm0, %v868_v57 }
 0x7d6   :  { %1088 = vmatpush.bf16.xpose.msrb.mxu1 %v1078_v11 }
 0x7de   :  { %1089 = vmatpush.bf16.xpose.msrb.mxu1 %v1075_v61 }
 0x7e5   :  { %1633 = vmatmul.msk.bf16.vlgmr.msra.gmra.mxu3 %vm120_vm0, %v1905_v20 }
 0x7e6   :  { %1090 = vmatpush.bf16.xpose.msrb.mxu1 %v1072_v42 }
 0x7ee   :  { %1091 = vmatpush.bf16.xpose.msrb.mxu1 %v1069_v45 }
 0x7f5   :  { %1634 = vmatmul.msk.bf16.gmra.mxu3 %vm120_vm0, %v1917_v27  ;;  %v1760_v27 = vld [vmem:[%s2427_s5 + $0x9] ss:$0 sm:$0xff] }
 0x7f6   :  { %1092 = vmatpush.bf16.xpose.msrb.mxu1 %v1066_v15 }
 0x7fe   :  { %1093 = vmatpush.bf16.xpose.msrb.mxu1 %v1063_v43 }
 0x805   :  { %1635 = vmatmul.msk.bf16.gmra.mxu3 %vm120_vm0, %v1929_v34 }
 0x815   :  { %1636 = vmatmul.msk.bf16.gmra.mxu3 %vm120_vm0, %v1941_v41 }
 0x825   :  { %1637 = vmatmul.msk.bf16.gmra.mxu3 %vm120_vm0, %v1953_v48 }
 0x835   :  { %1638 = vmatmul.msk.bf16.gmra.mxu3 %vm120_vm0, %v1965_v55  ;;  %v1761_v55 = vld [vmem:[%s2427_s5 + $0xb] ss:$0 sm:$0xff] }
 0x845   :  { %1639 = vmatmul.msk.bf16.gmra.mxu3 %vm120_vm0, %v1983_v0 }
 0x855   :  { %1640 = vmatmul.msk.bf16.gmra.mxu3 %vm120_vm0, %v1995_v7 }
 0x858   :  { %v903_v20 = vpop.f32.mrf.mxu3 }
 0x859   :  { %v904_v18 = vadd.f32 %v1760_v27, %v903_v20 }
 0x860   :  { %v905_v34 = vpop.f32.mrf.mxu3 }
 0x861   :  { %v906_v41 = vadd.f32 %v1760_v27, %v905_v34 }
 0x863   :  { %v1050_v37 = vpack.c.bf16 %v906_v41, %v904_v18 }
 0x865   :  { %1641 = vmatmul.msk.bf16.vlgmr.msrb.gmra.mxu1 %vm120_vm0, %v1050_v37 }
 0x868   :  { %v1010_v48 = vpop.f32.mrf.mxu3 }
 0x869   :  { %v1011_v8 = vadd.f32 %v1761_v55, %v1010_v48  ;;  %v1742_v48 = vld [vmem:[%s2424_s4 + $0xc8] sm:$0xff] }
 0x86a   :  { %1177 = vmatpush.bf16.msra.mxu1 %v1742_v48 }
 0x870   :  { %v1012_v0 = vpop.f32.mrf.mxu3 }
 0x871   :  { %v1013_v58 = vadd.f32 %v1761_v55, %v1012_v0 }
 0x873   :  { %v1123_v7 = vpack.c.bf16 %v1013_v58, %v1011_v8 }
 0x878   :  { %v1015_v56 = vpop.f32.mrf.mxu3 }
 0x879   :  { %v1016_v63 = vadd.f32 %v1761_v55, %v1015_v56  ;;  %v1746_v56 = vld [vmem:[%s2424_s4 + $0xd8] sm:$0xff] }
 0x880   :  { %v1017_v59 = vpop.f32.mrf.mxu3 }
 0x881   :  { %v1018_v52 = vadd.f32 %v1761_v55, %v1017_v59  ;;  %v1743_v59 = vld [vmem:[%s2430_s6] sm:$0xff] }
 0x883   :  { %v1124_v1 = vpack.c.bf16 %v1018_v52, %v1016_v63  ;;  %v1745_v63 = vld [vmem:[%s2424_s4 + $0xd0] sm:$0xff] }
 0x888   :  { %v1020_v50 = vpop.f32.mrf.mxu3 }
 0x889   :  { %v1021_v47 = vadd.f32 %v1761_v55, %v1020_v50 }
 0x890   :  { %v1022_v30 = vpop.f32.mrf.mxu3 }
 0x891   :  { %v1023_v32 = vadd.f32 %v1761_v55, %v1022_v30 }
 0x893   :  { %v1125_v33 = vpack.c.bf16 %v1023_v32, %v1021_v47 }
 0x898   :  { %v1025_v36 = vpop.f32.mrf.mxu3 }
 0x899   :  { %v1026_v2 = vadd.f32 %v1761_v55, %v1025_v36 }
 0x8a0   :  { %v1027_v28 = vpop.f32.mrf.mxu3 }
 0x8a1   :  { %v1028_v3 = vadd.f32 %v1761_v55, %v1027_v28  ;;  %v1748_v28 = vld [vmem:[%s2424_s4 + $0xe8] sm:$0xff] }
 0x8a3   :  { %v1126_v21 = vpack.c.bf16 %v1028_v3, %v1026_v2  ;;  %v1747_v2 = vld [vmem:[%s2424_s4 + $0xe0] sm:$0xff]  ;;  %v1763_v3 = vld [vmem:[%s2427_s5 + $0xd] ss:$0 sm:$0xff] }
 0x8a8   :  { %v1030_v4 = vpop.f32.mrf.mxu3 }
 0x8a9   :  { %v1031_v40 = vadd.f32 %v1761_v55, %v1030_v4 }
 0x8b0   :  { %v1032_v13 = vpop.f32.mrf.mxu3 }
 0x8b1   :  { %v1033_v22 = vadd.f32 %v1761_v55, %v1032_v13 }
 0x8b3   :  { %v1127_v49 = vpack.c.bf16 %v1033_v22, %v1031_v40 }
 0x8b8   :  { %v1035_v6 = vpop.f32.mrf.mxu3 }
 0x8b9   :  { %v1036_v12 = vadd.f32 %v1761_v55, %v1035_v6 }
 0x8c0   :  { %v1037_v9 = vpop.f32.mrf.mxu3 }
 0x8c1   :  { %v1038_v60 = vadd.f32 %v1761_v55, %v1037_v9 }
 0x8c3   :  { %v1128_v44 = vpack.c.bf16 %v1038_v60, %v1036_v12 }
 0x8c8   :  { %v1040_v14 = vpop.f32.mrf.mxu3 }
 0x8c9   :  { %v1041_v38 = vadd.f32 %v1761_v55, %v1040_v14 }
 0x8d0   :  { %v1042_v10 = vpop.f32.mrf.mxu3 }
 0x8d1   :  { %v1043_v26 = vadd.f32 %v1761_v55, %v1042_v10 }
 0x8d3   :  { %v1129_v53 = vpack.c.bf16 %v1043_v26, %v1041_v38 }
 0x8d8   :  { %v1045_v23 = vpop.f32.mrf.mxu3 }
 0x8d9   :  { %v1046_v24 = vadd.f32 %v1761_v55, %v1045_v23 }
 0x8e0   :  { %v1047_v31 = vpop.f32.mrf.mxu3 }
 0x8e1   :  { %v1048_v25 = vadd.f32 %v1761_v55, %v1047_v31  ;;  %v1741_v55 = vld [vmem:[%s2424_s4 + $0xc0] sm:$0xff] }
 0x8e2   :  { %v1095_v19 = vpop.f32.mrf.mxu1  ;;  %1178 = vmatpush.bf16.msra.mxu1 %v1741_v55 }
 0x8e3   :  { %v1130_v29 = vpack.c.bf16 %v1048_v25, %v1046_v24  ;;  %v1100_v35 = vmul.f32 0.17677669, %v1095_v19  ;;  %v1749_v19 = vld [vmem:[%s2430_s6 + $0x10] sm:$0xff] }
 0x8e5   :  { %1131 = vmatpush.bf16.msra.mxu2 %v1130_v29  ;;  %v1102_v39 = vadd.f32 %v1100_v35, %v2189_v5  ;;  %v1765_v29 = vld [vmem:[%s2427_s5 + $0xe] ss:$0 sm:$0xff] }
 0x8e6   :  { %1255 = vmatpush.bf16.msrb.mxu1 %v1746_v56 }
 0x8e7   :  { %1104 = vmax.xlane.f32.xlu2 %v1102_v39 }
 0x8e9   :  { %1132 = vmatpush.bf16.msra.mxu2 %v1129_v53 }
 0x8ea   :  { %v1097_v17 = vpop.f32.mrf.mxu1  ;;  %1256 = vmatpush.bf16.msrb.mxu1 %v1745_v63 }
 0x8eb   :  { %v1101_v62 = vmul.f32 0.17677669, %v1097_v17  ;;  %v1766_v17 = vld [vmem:[%s2431_s7 + $0x1] ss:$0 sm:$0xff] }
 0x8ed   :  { %1133 = vmatpush.bf16.msra.mxu2 %v1128_v44  ;;  %v1103_v46 = vadd.f32 %v1101_v62, %v2195_v51 }
 0x8ef   :  { %1106 = vmax.xlane.f32.xlu0 %v1103_v46 }
 0x8f1   :  { %1134 = vmatpush.bf16.msra.mxu2 %v1127_v49 }
 0x8f5   :  { %1135 = vmatpush.bf16.msra.mxu2 %v1126_v21  ;;  %v1764_v21 = vld [vmem:[%s2431_s7] ss:$0 sm:$0xff] }
 0x8f9   :  { %1136 = vmatpush.bf16.msra.mxu2 %v1125_v33 }
 0x8fd   :  { %1137 = vmatpush.bf16.msra.mxu2 %v1124_v1  ;;  %v1762_v1 = vld [vmem:[%s2427_s5 + $0xc] ss:$0 sm:$0xff] }
 0x901   :  { %1138 = vmatpush.bf16.msra.mxu2 %v1123_v7  ;;  %v1744_v7 = vld [vmem:[%s2430_s6 + $0x8] sm:$0xff] }
 0x905   :  { %1217 = vmatpush.bf16.msrb.mxu2 %v1744_v7 }
 0x909   :  { %1218 = vmatpush.bf16.msrb.mxu2 %v1743_v59 }
 0x95a   :  { %v1105_v5 = vpop.xlane.xlu2 %1104 }
 0x95b   :  { %v1108_v57 = vsub.f32 %v1102_v39, %v1105_v5 }
 0x95d   :  { %v1110_v11 = vmul.f32 1.442695, %v1108_v57 }
 0x95f   :  { %1783 = vpow2.f32 %v1110_v11 }
 0x962   :  { %v1107_v61 = vpop.xlane.xlu0 %1106 }
 0x963   :  { %v1109_v42 = vsub.f32 %v1103_v46, %v1107_v61 }
 0x965   :  { %v1784_v45 = vpop.eup %1783  ;;  %v1112_v15 = vmul.f32 1.442695, %v1109_v42 }
 0x966   :  { %1114 = vadd.xlane.f32.xlu1 %v1784_v45 }
 0x967   :  { %1785 = vpow2.f32 %v1112_v15 }
 0x96d   :  { %v1786_v43 = vpop.eup %1785 }
 0x96e   :  { %1116 = vadd.xlane.f32.xlu2 %v1786_v43 }
 0x9d9   :  { %v1115_v51 = vpop.xlane.xlu1 %1114 }
 0x9da   :  { %1787 = vrcp.f32 %v1115_v51 }
 0x9e0   :  { %v1788_v27 = vpop.eup %1787 }
 0x9e1   :  { %v1117_v20 = vpop.xlane.xlu2 %1116  ;;  %v1120_v18 = vmul.f32 %v1788_v27, %v1784_v45 }
 0x9e2   :  { %1789 = vrcp.f32 %v1117_v20 }
 0x9e8   :  { %v1790_v34 = vpop.eup %1789 }
 0x9e9   :  { %v1121_v41 = vmul.f32 %v1790_v34, %v1786_v43 }
 0x9eb   :  { %v1122_v37 = vpack.c.bf16 %v1121_v41, %v1120_v18 }
 0x9ed   :  { %1139 = vmatmul.bf16.vlgmr.msra.gmra.mxu2 %v1122_v37 }
 0x9ee   :  { %1297 = vmatpush.bf16.msra.mxu2 %v1748_v28 }
 0x9f2   :  { %1298 = vmatpush.bf16.msra.mxu2 %v1747_v2 }
 0xa70   :  { %v1140_v0 = vpop.f32.mrf.mxu2 }
 0xa78   :  { %v1142_v8 = vpop.f32.mrf.mxu2 }
 0xa79   :  { %v1145_v58 = vpack.c.bf16 %v1142_v8, %v1140_v0 }
 0xa7b   :  { %1655 = vmatmul.msk.bf16.vlgmr.msra.gmra.mxu1 %vm120_vm0, %v1145_v58 }
 0xaf8   :  { %v1180_v52 = vpop.f32.mrf.mxu1 }
 0xaf9   :  { %v1181_v50 = vadd.f32 %v1762_v1, %v1180_v52 }
 0xafb   :  { %v1185_v32 = vadd.f32 %v1181_v50, %v2318_v54  ;;  %v1750_v54 = vld [vmem:[%s2430_s6 + $0x18] sm:$0xff] }
 0xafc   :  { %1339 = vmatpush.bf16.msra.mxu0 %v1750_v54 }
 0xb00   :  { %v1182_v30 = vpop.f32.mrf.mxu1  ;;  %1340 = vmatpush.bf16.msra.mxu0 %v1749_v19 }
 0xb01   :  { %v1183_v47 = vadd.f32 %v1762_v1, %v1182_v30 }
 0xb03   :  { %v1186_v33 = vadd.f32 %v1183_v47, %v2321_v16 }
 0xb05   :  { %v1187_v36 = vpack.c.bf16 %v1186_v33, %v1185_v32 }
 0xb07   :  { %1664 = vmatmul.msk.bf16.vlgmr.msrb.gmra.mxu2 %vm120_vm0, %v1187_v36  ;;  %1678 = vmatmul.msk.bf16.vlgmr.msrb.gmra.mxu1 %vm120_vm0, %v1187_v36 }
 0xb84   :  { %v1258_v16 = vpop.f32.mrf.mxu1 }
 0xb85   :  { %v1259_v13 = vadd.f32 %v1763_v3, %v1258_v16 }
 0xb87   :  { %v1263_v10 = vmax.f32 %v1259_v13, 0.0 }
 0xb8a   :  { %v1220_v4 = vpop.f32.mrf.mxu2 }
 0xb8b   :  { %v1221_v6 = vadd.f32 %v1764_v21, %v1220_v4 }
 0xb8c   :  { %v1260_v9 = vpop.f32.mrf.mxu1 }
 0xb8d   :  { %1225 = vst [vmem:[%s2432_s8] sm:$0xff] %v1221_v6  ;;  %v1261_v14 = vadd.f32 %v1763_v3, %v1260_v9 }
 0xb8f   :  { %v1264_v23 = vmax.f32 %v1261_v14, 0.0 }
 0xb91   :  { %v1265_v31 = vpack.c.bf16 %v1264_v23, %v1263_v10 }
 0xb92   :  { %v1222_v24 = vpop.f32.mrf.mxu2 }
 0xb93   :  { %v1223_v25 = vadd.f32 %v1764_v21, %v1222_v24  ;;  %1692 = vmatmul.msk.bf16.vlgmr.msra.gmra.mxu2 %vm120_vm0, %v1265_v31 }
 0xb95   :  { %1226 = vst [vmem:[%s2432_s8 + $0x8] sm:$0xff] %v1223_v25 }
 0xc16   :  { %v1300_v26 = vpop.f32.mrf.mxu2 }
 0xc17   :  { %v1301_v35 = vadd.f32 %v1765_v29, %v1300_v26 }
 0xc19   :  { %v1305_v60 = vmax.f32 %v1301_v35, 0.0 }
 0xc1e   :  { %v1302_v38 = vpop.f32.mrf.mxu2 }
 0xc1f   :  { %v1303_v39 = vadd.f32 %v1765_v29, %v1302_v38 }
 0xc21   :  { %v1306_v53 = vmax.f32 %v1303_v39, 0.0 }
 0xc23   :  { %v1307_v12 = vpack.c.bf16 %v1306_v53, %v1305_v60 }
 0xc25   :  { %1706 = vmatmul.msk.bf16.vlgmr.msra.gmra.mxu0 %vm120_vm0, %v1307_v12 }
 0xca2   :  { %v1342_v22 = vpop.f32.mrf.mxu0 }
 0xca3   :  { %v1343_v44 = vadd.f32 %v1766_v17, %v1342_v22 }
 0xca5   :  { %v1707_v62 = vmul.f32 -1.442695, %v1343_v44 }
 0xca7   :  { %1791 = vpow2.f32 %v1707_v62 }
 0xcaa   :  { %v1344_v40 = vpop.f32.mrf.mxu0 }
 0xcab   :  { %v1345_v46 = vadd.f32 %v1766_v17, %v1344_v40 }
 0xcad   :  { %v1792_v49 = vpop.eup %1791  ;;  %v1708_v5 = vmul.f32 -1.442695, %v1345_v46 }
 0xcae   :  { %v1353_v57 = vadd.f32 1.0, %v1792_v49 }
 0xcaf   :  { %1793 = vpow2.f32 %v1708_v5 }
 0xcb0   :  { %1795 = vrcp.f32 %v1353_v57  ;;  %v1366_v43 = vand.u32 2147483648, %v1353_v57  ;;  %v1364_v20 = vand.u32 2147483647, %v1353_v57  ;;  %vm1360_vm2 = vweird.f32 %v1353_v57 }
 0xcb2   :  { %v1367_v18 = vor.u32 1.1754944e-38, %v1366_v43  ;;  %vm1365_vm4 = vcmp.eq.f32.partialorder %v1364_v20, 8.507059e+37 }
 0xcb5   :  { %v1794_v11 = vpop.eup %1793 }
 0xcb6   :  { %v1796_v61 = vpop.eup %1795  ;;  %v1354_v42 = vadd.f32 1.0, %v1794_v11 }
 0xcb7   :  { %v1356_v45 = vmul.f32 %v1796_v61, %v1353_v57  ;;  %vm1361_vm1 = vweird.f32 %v1796_v61 }
 0xcb8   :  { %1797 = vrcp.f32 %v1354_v42  ;;  %vm1362_vm3 = vmor %vm1360_vm2, %vm1361_vm1  ;;  %v1381_v0 = vand.u32 2147483648, %v1354_v42  ;;  %v1379_v58 = vand.u32 2147483647, %v1354_v42  ;;  %vm1375_vm6 = vweird.f32 %v1354_v42 }
 0xcb9   :  { %v1357_v15 = vsub.f32 1.0, %v1356_v45 }
 0xcba   :  { %v1382_v56 = vor.u32 1.1754944e-38, %v1381_v0  ;;  %vm1380_vm8 = vcmp.eq.f32.partialorder %v1379_v58, 8.507059e+37 }
 0xcbb   :  { %v1358_v51 = vmul.f32 %v1796_v61, %v1357_v15 }
 0xcbd   :  { %v1359_v27 = vadd.f32 %v1796_v61, %v1358_v51 }
 0xcbe   :  { %v1798_v34 = vpop.eup %1797 }
 0xcbf   :  { %v1363_v41 = vsel %vm1362_vm3, %v1796_v61, %v1359_v27  ;;  %v1371_v37 = vmul.f32 %v1798_v34, %v1354_v42  ;;  %vm1376_vm5 = vweird.f32 %v1798_v34 }
 0xcc0   :  { %v1368_v48 = vsel %vm1365_vm4, %v1367_v18, %v1363_v41  ;;  %vm1377_vm7 = vmor %vm1375_vm6, %vm1376_vm5 }
 0xcc1   :  { %1385 = vst [vmem:[%s2433_s9] sm:$0xff] %v1368_v48  ;;  %v1372_v55 = vsub.f32 1.0, %v1371_v37 }
 0xcc3   :  { %v1373_v8 = vmul.f32 %v1798_v34, %v1372_v55 }
 0xcc5   :  { %v1374_v7 = vadd.f32 %v1798_v34, %v1373_v8 }
 0xcc7   :  { %v1378_v59 = vsel %vm1377_vm7, %v1798_v34, %v1374_v7 }
 0xcc8   :  { %v1383_v63 = vsel %vm1380_vm8, %v1382_v56, %v1378_v59 }
 0xcc9   :  { %1386 = vst [vmem:[%s2433_s9 + $0x8] sm:$0xff] %v1383_v63 }

</bundles_post_ra>
